<compile_context>
chip_gen: v7x
topology: tpu7x:2x2x1
jax: 0.10.0
libtpu: 0.0.40
codegen_flags: <defaults>
</compile_context>

<pallas_src>
import jax
import jax.numpy as jnp
from jax import lax
from jax.experimental import pallas as pl
from jax.experimental.pallas import tpu as pltpu

# ---------------- synthetic Phi config (small, lane-dense) ----------------
SEQ = 16                      # number of tokens (single-sequence prefill)
HIDDEN = 128                  # hidden_size (multiple of 128 -> lane-dense)
NUM_HEADS = 4                 # num_attention_heads
HEAD_DIM = HIDDEN // NUM_HEADS            # 32
NUM_KV_HEADS = NUM_HEADS                  # Phi: n_head_kv defaults to num_heads
INTERMEDIATE = 4 * HIDDEN                 # 512
NUM_LAYERS = 2
VOCAB = 128
PARTIAL_ROTARY_FACTOR = 0.5
ROT_DIM = int(PARTIAL_ROTARY_FACTOR * HEAD_DIM)   # 16 (partial rotary)
HALF_ROT = ROT_DIM // 2                           # 8
ROPE_THETA = 10000.0
LN_EPS = 1e-5
SOFTMAX_SCALE = HEAD_DIM ** (-0.5)
Q_SIZE = NUM_HEADS * HEAD_DIM             # 128
KV_SIZE = NUM_KV_HEADS * HEAD_DIM         # 128
QKV_OUT = Q_SIZE + 2 * KV_SIZE            # 384
_SQRT_2_OVER_PI = 0.7978845608028654
# hidden_act = 'gelu_pytorch_tanh' -> gelu(approximate='tanh')


# ---------------- the fused model kernel (one grid step == one layer) -------
def phi_model_kernel(x_ref, cos_ref, sinm_ref, sinp_ref, mask_ref,
                     fln_w_ref, fln_b_ref,
                     ln_w_ref, ln_b_ref,
                     qkv_w_ref, qkv_b_ref,
                     dense_w_ref, dense_b_ref,
                     fc1_w_ref, fc1_b_ref,
                     fc2_w_ref, fc2_b_ref,
                     o_ref,
                     hid_ref):
    layer = pl.program_id(0)

    # Residual stream lives in VMEM scratch across layers (no HBM round-trip).
    @pl.when(layer == 0)
    def _():
        hid_ref[...] = x_ref[...].astype(jnp.float32)

    x = hid_ref[...]                                        # (S, H) f32 residual
    s_len = x.shape[0]

    # ---- input LayerNorm (f32) ----
    mean = jnp.mean(x, axis=-1, keepdims=True)
    var = jnp.mean(jnp.square(x - mean), axis=-1, keepdims=True)
    normed = (x - mean) * lax.rsqrt(var + LN_EPS)
    normed = normed * ln_w_ref[0] + ln_b_ref[0]
    normed_bf = normed.astype(jnp.bfloat16)                 # MXU input

    # ---- QKV projection (bf16 MXU, f32 accumulate) ----
    qkv = jnp.dot(normed_bf, qkv_w_ref[0], preferred_element_type=jnp.float32)
    qkv = qkv + qkv_b_ref[0]
    q = qkv[:, :Q_SIZE]                                     # 128-aligned slices
    k = qkv[:, Q_SIZE:Q_SIZE + KV_SIZE]
    v = qkv[:, Q_SIZE + KV_SIZE:]

    # ---- partial RoPE: cos FMA + XLU rolls with signed-sin masks ----
    cos = cos_ref[...]
    sinm = sinm_ref[...]     # -sin on first-half rotary lanes of each head, else 0
    sinp = sinp_ref[...]     # +sin on second-half rotary lanes of each head, else 0

    def rope(t):
        fwd = pltpu.roll(t, shift=HALF_ROT, axis=1)             # t[l - HALF_ROT]
        bwd = pltpu.roll(t, shift=Q_SIZE - HALF_ROT, axis=1)    # t[l + HALF_ROT]
        return t * cos + bwd * sinm + fwd * sinp

    q = rope(q)
    k = rope(k)

    # ---- batched-head causal attention (bf16 matmuls, f32 softmax) ----
    def split_heads(t):      # (S, NH*D) -> (NH, S, D)
        return jnp.stack(
            [t[:, h * HEAD_DIM:(h + 1) * HEAD_DIM] for h in range(NUM_HEADS)],
            axis=0)

    q3 = split_heads(q * SOFTMAX_SCALE).astype(jnp.bfloat16)
    k3 = split_heads(k).astype(jnp.bfloat16)
    v3 = split_heads(v).astype(jnp.bfloat16)

    # scores[h, q, k] = q3[h, q, :] . k3[h, k, :]
    scores = lax.dot_general(q3, k3, (((2,), (2,)), ((0,), (0,))),
                             preferred_element_type=jnp.float32)   # (NH, S, S)
    scores = scores + mask_ref[...][None, :, :]                    # causal bias
    m = jnp.max(scores, axis=-1, keepdims=True)
    p = jnp.exp(scores - m)
    denom = jnp.sum(p, axis=-1, keepdims=True)
    p = p * pl.reciprocal(denom, approx=True)                      # EUP
    o3 = lax.dot_general(p.astype(jnp.bfloat16), v3,
                         (((2,), (1,)), ((0,), (0,))),
                         preferred_element_type=jnp.float32)       # (NH, S, D)

    # ---- dense projection: per-head batched matmul + head-sum ----
    # sum_h o3[h] @ W_dense[h]  ==  concat_h(o3[h]) @ W_dense
    ctx = lax.dot_general(o3.astype(jnp.bfloat16), dense_w_ref[0],
                          (((2,), (1,)), ((0,), (0,))),
                          preferred_element_type=jnp.float32)      # (NH, S, H)
    attn_out = jnp.sum(ctx, axis=0) + dense_b_ref[0]

    # ---- MLP (parallel branch on the same normed hidden states) ----
    # TODO(synk): at production Phi sizes tile fc1/fc2 over the intermediate dim
    # (extra "arbitrary" grid axis + accumulator) instead of keeping them whole
    # in VMEM; re-size for v7x's 64 MiB VMEM.
    h1 = jnp.dot(normed_bf, fc1_w_ref[0], preferred_element_type=jnp.float32)
    h1 = h1 + fc1_b_ref[0]
    h1 = 0.5 * h1 * (1.0 + jnp.tanh(_SQRT_2_OVER_PI *
                                    (h1 + 0.044715 * (h1 * h1 * h1))))
    mlp_out = jnp.dot(h1.astype(jnp.bfloat16), fc2_w_ref[0],
                      preferred_element_type=jnp.float32)
    mlp_out = mlp_out + fc2_b_ref[0]

    # ---- combine: (mlp + attn) + residual; keep residual resident ----
    new_hid = mlp_out + attn_out + x
    hid_ref[...] = new_hid

    # ---- final LayerNorm fused into the last grid step ----
    @pl.when(layer == pl.num_programs(0) - 1)
    def _():
        fmean = jnp.mean(new_hid, axis=-1, keepdims=True)
        fvar = jnp.mean(jnp.square(new_hid - fmean), axis=-1, keepdims=True)
        y = (new_hid - fmean) * lax.rsqrt(fvar + LN_EPS)
        y = y * fln_w_ref[...] + fln_b_ref[...]
        o_ref[...] = y.astype(o_ref.dtype)


# ---------------- wrapper ----------------
def get_cos_sin(position_ids):
    inv_freq = 1.0 / (ROPE_THETA ** (jnp.arange(0, ROT_DIM, 2, dtype=jnp.float32)
                                     / ROT_DIM))
    pos = position_ids.astype(jnp.float32)
    freqs = pos[:, None] * inv_freq[None, :]                 # (S, HALF_ROT)
    return jnp.cos(freqs), jnp.sin(freqs)


def build_rope_tables(cos, sin):
    """Lane-dense full-width cos table + signed sin masks for the roll-based
    rotate_half:  out = x*cos + roll(x,+HALF)*sin_plus + roll(x,-HALF)*sin_minus.
    Pass-through (non-rotary) dims get cos=1, sin=0."""
    s = cos.shape[0]
    ones_pass = jnp.ones((s, HEAD_DIM - ROT_DIM), jnp.float32)
    zeros_pass = jnp.zeros((s, HEAD_DIM - ROT_DIM), jnp.float32)
    zeros_half = jnp.zeros((s, HALF_ROT), jnp.float32)
    cos_head = jnp.concatenate([cos, cos, ones_pass], axis=-1)        # (S, D)
    sinm_head = jnp.concatenate([-sin, zeros_half, zeros_pass], axis=-1)
    sinp_head = jnp.concatenate([zeros_half, sin, zeros_pass], axis=-1)
    cos_full = jnp.tile(cos_head, (1, NUM_HEADS))                     # (S, NH*D)
    sinm_full = jnp.tile(sinm_head, (1, NUM_HEADS))
    sinp_full = jnp.tile(sinp_head, (1, NUM_HEADS))
    return cos_full, sinm_full, sinp_full


def phi_model_forward(input_ids, position_ids, params):
    """FlashPhiModel.forward (single shard, single-sequence prefill path)."""
    # TODO(synk): paged KV cache (reshape_and_cache / block_tables / slots /
    # decode paged_attention), cu_seqlen varlen batching, LoRA adapter_data, and
    # the tensor-parallel all_reduce have no clean single-device Pallas
    # equivalent here.
    # TODO(synk): on v7x, add a "parallel" grid axis over token tiles so both
    # TensorCores are used once the sequence is long enough to tile.
    hidden = jnp.take(params["embed"], input_ids, axis=0).astype(jnp.float32)
    s = hidden.shape[0]

    cos, sin = get_cos_sin(position_ids)
    cos_full, sinm_full, sinp_full = build_rope_tables(cos, sin)

    row = jnp.arange(s, dtype=jnp.int32)[:, None]
    col = jnp.arange(s, dtype=jnp.int32)[None, :]
    mask = jnp.where(col <= row, 0.0, -1e30).astype(jnp.float32)      # (S, S)

    def const_spec(shape):
        nzeros = len(shape)
        return pl.BlockSpec(shape, lambda l, _n=nzeros: (0,) * _n)

    def per_layer_spec(shape):
        nzeros = len(shape)
        return pl.BlockSpec((1,) + shape, lambda l, _n=nzeros: (l,) + (0,) * _n)

    grid_spec = pltpu.PrefetchScalarGridSpec(
        num_scalar_prefetch=0,
        grid=(NUM_LAYERS,),
        in_specs=[
            const_spec((s, HIDDEN)),                         # x (embedded tokens)
            const_spec((s, Q_SIZE)),                         # cos
            const_spec((s, Q_SIZE)),                         # sin_minus
            const_spec((s, Q_SIZE)),                         # sin_plus
            const_spec((s, s)),                              # causal mask bias
            const_spec((1, HIDDEN)),                         # final_ln_w
            const_spec((1, HIDDEN)),                         # final_ln_b
            per_layer_spec((1, HIDDEN)),                     # ln_w
            per_layer_spec((1, HIDDEN)),                     # ln_b
            per_layer_spec((HIDDEN, QKV_OUT)),               # qkv_w (bf16)
            per_layer_spec((1, QKV_OUT)),                    # qkv_b
            per_layer_spec((NUM_HEADS, HEAD_DIM, HIDDEN)),   # dense_w (bf16)
            per_layer_spec((1, HIDDEN)),                     # dense_b
            per_layer_spec((HIDDEN, INTERMEDIATE)),          # fc1_w (bf16)
            per_layer_spec((1, INTERMEDIATE)),               # fc1_b
            per_layer_spec((INTERMEDIATE, HIDDEN)),          # fc2_w (bf16)
            per_layer_spec((1, HIDDEN)),                     # fc2_b
        ],
        out_specs=pl.BlockSpec((s, HIDDEN), lambda l: (0, 0)),
        scratch_shapes=[pltpu.VMEM((s, HIDDEN), jnp.float32)],
    )

    return pl.pallas_call(
        phi_model_kernel,
        grid_spec=grid_spec,
        out_shape=jax.ShapeDtypeStruct((s, HIDDEN), jnp.float32),
        compiler_params=pltpu.CompilerParams(
            dimension_semantics=("arbitrary",)),
    )(hidden, cos_full, sinm_full, sinp_full, mask,
      params["final_ln_w"], params["final_ln_b"],
      params["ln_w"], params["ln_b"],
      params["qkv_w"], params["qkv_b"],
      params["dense_w"], params["dense_b"],
      params["fc1_w"], params["fc1_b"],
      params["fc2_w"], params["fc2_b"])


# ---------------- parameter setup ----------------
def init_params(key):
    def nrm(k, shape, scale, dtype):
        return (jax.random.normal(k, shape, jnp.float32) * scale).astype(dtype)

    keys = jax.random.split(key, 13)
    L = NUM_LAYERS
    return {
        "embed": nrm(keys[0], (VOCAB, HIDDEN), 0.02, jnp.float32),
        "final_ln_w": 1.0 + nrm(keys[1], (1, HIDDEN), 0.02, jnp.float32),
        "final_ln_b": nrm(keys[2], (1, HIDDEN), 0.02, jnp.float32),
        # Per-layer params stacked on a leading layer axis.  Matmul weights are
        # stored bf16, (in, out) = PyTorch Linear weight transposed; qkv packed
        # as [Q | K | V] along the out dim.  dense_w is pre-reshaped to
        # (NH, HEAD_DIM, HIDDEN) for the per-head-batched dense projection.
        "ln_w": 1.0 + nrm(keys[3], (L, 1, HIDDEN), 0.02, jnp.float32),
        "ln_b": nrm(keys[4], (L, 1, HIDDEN), 0.02, jnp.float32),
        "qkv_w": nrm(keys[5], (L, HIDDEN, QKV_OUT), 0.02, jnp.bfloat16),
        "qkv_b": nrm(keys[6], (L, 1, QKV_OUT), 0.01, jnp.float32),
        "dense_w": nrm(keys[7], (L, NUM_HEADS, HEAD_DIM, HIDDEN), 0.02, jnp.bfloat16),
        "dense_b": nrm(keys[8], (L, 1, HIDDEN), 0.01, jnp.float32),
        "fc1_w": nrm(keys[9], (L, HIDDEN, INTERMEDIATE), 0.02, jnp.bfloat16),
        "fc1_b": nrm(keys[10], (L, 1, INTERMEDIATE), 0.01, jnp.float32),
        "fc2_w": nrm(keys[11], (L, INTERMEDIATE, HIDDEN), 0.02, jnp.bfloat16),
        "fc2_b": nrm(keys[12], (L, 1, HIDDEN), 0.01, jnp.float32),
    }


if __name__ == "__main__":
    key = jax.random.PRNGKey(0)
    pkey, ikey = jax.random.split(key)
    params = init_params(pkey)
    input_ids = jax.random.randint(ikey, (SEQ,), 0, VOCAB, dtype=jnp.int32)
    position_ids = jnp.arange(SEQ, dtype=jnp.int32)

    out = jax.jit(phi_model_forward)(input_ids, position_ids, params)
    jax.block_until_ready(out)
    assert out.shape == (SEQ, HIDDEN)
    print("KERNEL_OK")
</pallas_src>

<mosaic_0001>
module attributes {stable_mosaic.version = 11 : i64} {
  func.func @phi_model_kernel(%arg0: i32, %arg1: memref<16x128xf32, #tpu.memory_space<vmem>>, %arg2: memref<16x128xf32, #tpu.memory_space<vmem>>, %arg3: memref<16x128xf32, #tpu.memory_space<vmem>>, %arg4: memref<16x128xf32, #tpu.memory_space<vmem>>, %arg5: memref<16x16xf32, #tpu.memory_space<vmem>>, %arg6: memref<1x128xf32, #tpu.memory_space<vmem>>, %arg7: memref<1x128xf32, #tpu.memory_space<vmem>>, %arg8: memref<1x1x128xf32, #tpu.memory_space<vmem>>, %arg9: memref<1x1x128xf32, #tpu.memory_space<vmem>>, %arg10: memref<1x128x384xbf16, #tpu.memory_space<vmem>>, %arg11: memref<1x1x384xf32, #tpu.memory_space<vmem>>, %arg12: memref<1x4x32x128xbf16, #tpu.memory_space<vmem>>, %arg13: memref<1x1x128xf32, #tpu.memory_space<vmem>>, %arg14: memref<1x128x512xbf16, #tpu.memory_space<vmem>>, %arg15: memref<1x1x512xf32, #tpu.memory_space<vmem>>, %arg16: memref<1x512x128xbf16, #tpu.memory_space<vmem>>, %arg17: memref<1x1x128xf32, #tpu.memory_space<vmem>>, %arg18: memref<16x128xf32, #tpu.memory_space<vmem>>, %arg19: memref<16x128xf32, #tpu.memory_space<vmem>>) attributes {dimension_semantics = [#tpu.dimension_semantics<arbitrary>], iteration_bounds = array<i64: 2>, scalar_prefetch = 0 : i64, scratch_operands = 1 : i64, tpu.core_type = #tpu.core_type<tc>, window_params = [{pipeline_mode = #tpu.pipeline_mode<synchronous>, transform_indices = @transform_0, window_bounds = array<i64: 16, 128>}, {pipeline_mode = #tpu.pipeline_mode<synchronous>, transform_indices = @transform_1, window_bounds = array<i64: 16, 128>}, {pipeline_mode = #tpu.pipeline_mode<synchronous>, transform_indices = @transform_2, window_bounds = array<i64: 16, 128>}, {pipeline_mode = #tpu.pipeline_mode<synchronous>, transform_indices = @transform_3, window_bounds = array<i64: 16, 128>}, {pipeline_mode = #tpu.pipeline_mode<synchronous>, transform_indices = @transform_4, window_bounds = array<i64: 16, 16>}, {pipeline_mode = #tpu.pipeline_mode<synchronous>, transform_indices = @transform_5, window_bounds = array<i64: 1, 128>}, {pipeline_mode = #tpu.pipeline_mode<synchronous>, transform_indices = @transform_6, window_bounds = array<i64: 1, 128>}, {transform_indices = @transform_7, window_bounds = array<i64: 1, 1, 128>}, {transform_indices = @transform_8, window_bounds = array<i64: 1, 1, 128>}, {transform_indices = @transform_9, window_bounds = array<i64: 1, 128, 384>}, {transform_indices = @transform_10, window_bounds = array<i64: 1, 1, 384>}, {transform_indices = @transform_11, window_bounds = array<i64: 1, 4, 32, 128>}, {transform_indices = @transform_12, window_bounds = array<i64: 1, 1, 128>}, {transform_indices = @transform_13, window_bounds = array<i64: 1, 128, 512>}, {transform_indices = @transform_14, window_bounds = array<i64: 1, 1, 512>}, {transform_indices = @transform_15, window_bounds = array<i64: 1, 512, 128>}, {transform_indices = @transform_16, window_bounds = array<i64: 1, 1, 128>}, {pipeline_mode = #tpu.pipeline_mode<synchronous>, transform_indices = @transform_17, window_bounds = array<i64: 16, 128>}]} {
    %c0_i32 = arith.constant 0 : i32
    %0 = arith.cmpi eq, %arg0, %c0_i32 : i32
    %1 = arith.extui %0 : i1 to i32
    %c0_i32_0 = arith.constant 0 : i32
    %2 = arith.cmpi ne, %1, %c0_i32_0 : i32
    scf.if %2 {
      %c0_64 = arith.constant 0 : index
      %c0_65 = arith.constant 0 : index
      %150 = vector.load %arg1[%c0_64, %c0_65] : memref<16x128xf32, #tpu.memory_space<vmem>>, vector<16x128xf32>
      %c0_66 = arith.constant 0 : index
      %c0_67 = arith.constant 0 : index
      %151 = vector.load %arg19[%c0_66, %c0_67] : memref<16x128xf32, #tpu.memory_space<vmem>>, vector<16x128xf32>
      tpu.vector_store %arg19[%c0_66, %c0_67], %150 {strides = array<i32>} : memref<16x128xf32, #tpu.memory_space<vmem>>, vector<16x128xf32>,
    } else {
    }
    %c0 = arith.constant 0 : index
    %c0_1 = arith.constant 0 : index
    %3 = vector.load %arg19[%c0, %c0_1] : memref<16x128xf32, #tpu.memory_space<vmem>>, vector<16x128xf32>
    %cst = arith.constant dense<0.000000e+00> : vector<16xf32>
    %4 = vector.multi_reduction <add>, %3, %cst [1] : vector<16x128xf32> to vector<16xf32>
    %5 = vector.shape_cast %4 : vector<16xf32> to vector<16x1xf32>
    %cst_2 = arith.constant 1.280000e+02 : f32
    %6 = vector.broadcast %cst_2 : f32 to vector<16x1xf32>
    %7 = arith.divf %5, %6 : vector<16x1xf32>
    %8 = vector.broadcast %7 : vector<16x1xf32> to vector<16x128xf32>
    %9 = arith.subf %3, %8 : vector<16x128xf32>
    %10 = arith.mulf %9, %9 : vector<16x128xf32>
    %cst_3 = arith.constant dense<0.000000e+00> : vector<16xf32>
    %11 = vector.multi_reduction <add>, %10, %cst_3 [1] : vector<16x128xf32> to vector<16xf32>
    %12 = vector.shape_cast %11 : vector<16xf32> to vector<16x1xf32>
    %cst_4 = arith.constant 1.280000e+02 : f32
    %13 = vector.broadcast %cst_4 : f32 to vector<16x1xf32>
    %14 = arith.divf %12, %13 : vector<16x1xf32>
    %15 = vector.broadcast %7 : vector<16x1xf32> to vector<16x128xf32>
    %16 = arith.subf %3, %15 : vector<16x128xf32>
    %cst_5 = arith.constant 9.99999974E-6 : f32
    %17 = vector.broadcast %cst_5 : f32 to vector<16x1xf32>
    %18 = arith.addf %14, %17 : vector<16x1xf32>
    %19 = math.rsqrt %18 : vector<16x1xf32>
    %20 = vector.broadcast %19 : vector<16x1xf32> to vector<16x128xf32>
    %21 = arith.mulf %16, %20 : vector<16x128xf32>
    %c0_6 = arith.constant 0 : index
    %c0_7 = arith.constant 0 : index
    %c0_8 = arith.constant 0 : index
    %22 = vector.load %arg8[%c0_6, %c0_7, %c0_8] : memref<1x1x128xf32, #tpu.memory_space<vmem>>, vector<1x1x128xf32>
    %23 = vector.shape_cast %22 : vector<1x1x128xf32> to vector<1x128xf32>
    %24 = vector.broadcast %23 : vector<1x128xf32> to vector<16x128xf32>
    %25 = arith.mulf %21, %24 : vector<16x128xf32>
    %c0_9 = arith.constant 0 : index
    %c0_10 = arith.constant 0 : index
    %c0_11 = arith.constant 0 : index
    %26 = vector.load %arg9[%c0_9, %c0_10, %c0_11] : memref<1x1x128xf32, #tpu.memory_space<vmem>>, vector<1x1x128xf32>
    %27 = vector.shape_cast %26 : vector<1x1x128xf32> to vector<1x128xf32>
    %28 = vector.broadcast %27 : vector<1x128xf32> to vector<16x128xf32>
    %29 = arith.addf %25, %28 : vector<16x128xf32>
    %30 = arith.truncf %29 : vector<16x128xf32> to vector<16x128xbf16>
    %c0_12 = arith.constant 0 : index
    %c0_13 = arith.constant 0 : index
    %c0_14 = arith.constant 0 : index
    %31 = vector.load %arg10[%c0_12, %c0_13, %c0_14] : memref<1x128x384xbf16, #tpu.memory_space<vmem>>, vector<1x128x384xbf16>
    %32 = vector.shape_cast %31 : vector<1x128x384xbf16> to vector<128x384xbf16>
    %cst_15 = arith.constant dense<0.000000e+00> : vector<16x384xf32>
    %33 = tpu.matmul %30, %32, %cst_15 {dimension_numbers = #tpu.dot_dimension_numbers<[1], [0], [0], [1], [0, 0, 1, 1], [], []>} : vector<16x128xbf16>, vector<128x384xbf16>, vector<16x384xf32> -> vector<16x384xf32>
    %c0_16 = arith.constant 0 : index
    %c0_17 = arith.constant 0 : index
    %c0_18 = arith.constant 0 : index
    %34 = vector.load %arg11[%c0_16, %c0_17, %c0_18] : memref<1x1x384xf32, #tpu.memory_space<vmem>>, vector<1x1x384xf32>
    %35 = vector.shape_cast %34 : vector<1x1x384xf32> to vector<1x384xf32>
    %36 = vector.broadcast %35 : vector<1x384xf32> to vector<16x384xf32>
    %37 = arith.addf %33, %36 : vector<16x384xf32>
    %38 = vector.extract_strided_slice %37 {offsets = [0, 0], sizes = [16, 128], strides = [1, 1]} : vector<16x384xf32> to vector<16x128xf32>
    %39 = vector.extract_strided_slice %37 {offsets = [0, 128], sizes = [16, 128], strides = [1, 1]} : vector<16x384xf32> to vector<16x128xf32>
    %40 = vector.extract_strided_slice %37 {offsets = [0, 256], sizes = [16, 128], strides = [1, 1]} : vector<16x384xf32> to vector<16x128xf32>
    %c0_19 = arith.constant 0 : index
    %c0_20 = arith.constant 0 : index
    %41 = vector.load %arg2[%c0_19, %c0_20] : memref<16x128xf32, #tpu.memory_space<vmem>>, vector<16x128xf32>
    %c0_21 = arith.constant 0 : index
    %c0_22 = arith.constant 0 : index
    %42 = vector.load %arg3[%c0_21, %c0_22] : memref<16x128xf32, #tpu.memory_space<vmem>>, vector<16x128xf32>
    %c0_23 = arith.constant 0 : index
    %c0_24 = arith.constant 0 : index
    %43 = vector.load %arg4[%c0_23, %c0_24] : memref<16x128xf32, #tpu.memory_space<vmem>>, vector<16x128xf32>
    %c8_i32 = arith.constant 8 : i32
    %44 = tpu.dynamic_rotate %38 by %c8_i32 dim 1 : vector<16x128xf32>, i32 -> vector<16x128xf32>
    %c120_i32 = arith.constant 120 : i32
    %45 = tpu.dynamic_rotate %38 by %c120_i32 dim 1 : vector<16x128xf32>, i32 -> vector<16x128xf32>
    %46 = arith.mulf %38, %41 : vector<16x128xf32>
    %47 = arith.mulf %45, %42 : vector<16x128xf32>
    %48 = arith.addf %46, %47 : vector<16x128xf32>
    %49 = arith.mulf %44, %43 : vector<16x128xf32>
    %50 = arith.addf %48, %49 : vector<16x128xf32>
    %c8_i32_25 = arith.constant 8 : i32
    %51 = tpu.dynamic_rotate %39 by %c8_i32_25 dim 1 : vector<16x128xf32>, i32 -> vector<16x128xf32>
    %c120_i32_26 = arith.constant 120 : i32
    %52 = tpu.dynamic_rotate %39 by %c120_i32_26 dim 1 : vector<16x128xf32>, i32 -> vector<16x128xf32>
    %53 = arith.mulf %39, %41 : vector<16x128xf32>
    %54 = arith.mulf %52, %42 : vector<16x128xf32>
    %55 = arith.addf %53, %54 : vector<16x128xf32>
    %56 = arith.mulf %51, %43 : vector<16x128xf32>
    %57 = arith.addf %55, %56 : vector<16x128xf32>
    %cst_27 = arith.constant 0.176776692 : f32
    %58 = vector.broadcast %cst_27 : f32 to vector<16x128xf32>
    %59 = arith.mulf %50, %58 : vector<16x128xf32>
    %60 = vector.extract_strided_slice %59 {offsets = [0, 0], sizes = [16, 32], strides = [1, 1]} : vector<16x128xf32> to vector<16x32xf32>
    %61 = vector.extract_strided_slice %59 {offsets = [0, 32], sizes = [16, 32], strides = [1, 1]} : vector<16x128xf32> to vector<16x32xf32>
    %62 = vector.extract_strided_slice %59 {offsets = [0, 64], sizes = [16, 32], strides = [1, 1]} : vector<16x128xf32> to vector<16x32xf32>
    %63 = vector.extract_strided_slice %59 {offsets = [0, 96], sizes = [16, 32], strides = [1, 1]} : vector<16x128xf32> to vector<16x32xf32>
    %64 = vector.shape_cast %60 : vector<16x32xf32> to vector<1x16x32xf32>
    %65 = vector.shape_cast %61 : vector<16x32xf32> to vector<1x16x32xf32>
    %66 = vector.shape_cast %62 : vector<16x32xf32> to vector<1x16x32xf32>
    %67 = vector.shape_cast %63 : vector<16x32xf32> to vector<1x16x32xf32>
    %68 = tpu.concatenate %64, %65, %66, %67 in 0 : vector<1x16x32xf32>, vector<1x16x32xf32>, vector<1x16x32xf32>, vector<1x16x32xf32> -> vector<4x16x32xf32>
    %69 = arith.truncf %68 : vector<4x16x32xf32> to vector<4x16x32xbf16>
    %70 = vector.extract_strided_slice %57 {offsets = [0, 0], sizes = [16, 32], strides = [1, 1]} : vector<16x128xf32> to vector<16x32xf32>
    %71 = vector.extract_strided_slice %57 {offsets = [0, 32], sizes = [16, 32], strides = [1, 1]} : vector<16x128xf32> to vector<16x32xf32>
    %72 = vector.extract_strided_slice %57 {offsets = [0, 64], sizes = [16, 32], strides = [1, 1]} : vector<16x128xf32> to vector<16x32xf32>
    %73 = vector.extract_strided_slice %57 {offsets = [0, 96], sizes = [16, 32], strides = [1, 1]} : vector<16x128xf32> to vector<16x32xf32>
    %74 = vector.shape_cast %70 : vector<16x32xf32> to vector<1x16x32xf32>
    %75 = vector.shape_cast %71 : vector<16x32xf32> to vector<1x16x32xf32>
    %76 = vector.shape_cast %72 : vector<16x32xf32> to vector<1x16x32xf32>
    %77 = vector.shape_cast %73 : vector<16x32xf32> to vector<1x16x32xf32>
    %78 = tpu.concatenate %74, %75, %76, %77 in 0 : vector<1x16x32xf32>, vector<1x16x32xf32>, vector<1x16x32xf32>, vector<1x16x32xf32> -> vector<4x16x32xf32>
    %79 = arith.truncf %78 : vector<4x16x32xf32> to vector<4x16x32xbf16>
    %80 = vector.extract_strided_slice %40 {offsets = [0, 0], sizes = [16, 32], strides = [1, 1]} : vector<16x128xf32> to vector<16x32xf32>
    %81 = vector.extract_strided_slice %40 {offsets = [0, 32], sizes = [16, 32], strides = [1, 1]} : vector<16x128xf32> to vector<16x32xf32>
    %82 = vector.extract_strided_slice %40 {offsets = [0, 64], sizes = [16, 32], strides = [1, 1]} : vector<16x128xf32> to vector<16x32xf32>
    %83 = vector.extract_strided_slice %40 {offsets = [0, 96], sizes = [16, 32], strides = [1, 1]} : vector<16x128xf32> to vector<16x32xf32>
    %84 = vector.shape_cast %80 : vector<16x32xf32> to vector<1x16x32xf32>
    %85 = vector.shape_cast %81 : vector<16x32xf32> to vector<1x16x32xf32>
    %86 = vector.shape_cast %82 : vector<16x32xf32> to vector<1x16x32xf32>
    %87 = vector.shape_cast %83 : vector<16x32xf32> to vector<1x16x32xf32>
    %88 = tpu.concatenate %84, %85, %86, %87 in 0 : vector<1x16x32xf32>, vector<1x16x32xf32>, vector<1x16x32xf32>, vector<1x16x32xf32> -> vector<4x16x32xf32>
    %89 = arith.truncf %88 : vector<4x16x32xf32> to vector<4x16x32xbf16>
    %cst_28 = arith.constant dense<0.000000e+00> : vector<4x16x16xf32>
    %90 = tpu.matmul %69, %79, %cst_28 {dimension_numbers = #tpu.dot_dimension_numbers<[2], [2], [1], [1], [0, 0, 0, 1, 1, 1], [0], [0]>} : vector<4x16x32xbf16>, vector<4x16x32xbf16>, vector<4x16x16xf32> -> vector<4x16x16xf32>
    %c0_29 = arith.constant 0 : index
    %c0_30 = arith.constant 0 : index
    %91 = vector.load %arg5[%c0_29, %c0_30] : memref<16x16xf32, #tpu.memory_space<vmem>>, vector<16x16xf32>
    %92 = vector.shape_cast %91 : vector<16x16xf32> to vector<1x16x16xf32>
    %93 = vector.broadcast %92 : vector<1x16x16xf32> to vector<4x16x16xf32>
    %94 = arith.addf %90, %93 : vector<4x16x16xf32>
    %cst_31 = arith.constant dense<0xFF800000> : vector<4x16xf32>
    %95 = vector.multi_reduction <maximumf>, %94, %cst_31 [2] : vector<4x16x16xf32> to vector<4x16xf32>
    %96 = vector.shape_cast %95 : vector<4x16xf32> to vector<4x16x1xf32>
    %97 = vector.broadcast %96 : vector<4x16x1xf32> to vector<4x16x16xf32>
    %98 = arith.subf %94, %97 : vector<4x16x16xf32>
    %99 = math.exp %98 : vector<4x16x16xf32>
    %cst_32 = arith.constant dense<0.000000e+00> : vector<4x16xf32>
    %100 = vector.multi_reduction <add>, %99, %cst_32 [2] : vector<4x16x16xf32> to vector<4x16xf32>
    %101 = vector.shape_cast %100 : vector<4x16xf32> to vector<4x16x1xf32>
    %102 = tpu.reciprocal %101 {approx = true} : vector<4x16x1xf32> -> vector<4x16x1xf32>
    %103 = vector.broadcast %102 : vector<4x16x1xf32> to vector<4x16x16xf32>
    %104 = arith.mulf %99, %103 : vector<4x16x16xf32>
    %105 = arith.truncf %104 : vector<4x16x16xf32> to vector<4x16x16xbf16>
    %cst_33 = arith.constant dense<0.000000e+00> : vector<4x16x32xf32>
    %106 = tpu.matmul %105, %89, %cst_33 {dimension_numbers = #tpu.dot_dimension_numbers<[2], [1], [1], [2], [0, 0, 0, 1, 1, 2], [0], [0]>} : vector<4x16x16xbf16>, vector<4x16x32xbf16>, vector<4x16x32xf32> -> vector<4x16x32xf32>
    %107 = arith.truncf %106 : vector<4x16x32xf32> to vector<4x16x32xbf16>
    %c0_34 = arith.constant 0 : index
    %c0_35 = arith.constant 0 : index
    %c0_36 = arith.constant 0 : index
    %c0_37 = arith.constant 0 : index
    %108 = vector.load %arg12[%c0_34, %c0_35, %c0_36, %c0_37] : memref<1x4x32x128xbf16, #tpu.memory_space<vmem>>, vector<1x4x32x128xbf16>
    %109 = vector.shape_cast %108 : vector<1x4x32x128xbf16> to vector<4x32x128xbf16>
    %cst_38 = arith.constant dense<0.000000e+00> : vector<4x16x128xf32>
    %110 = tpu.matmul %107, %109, %cst_38 {dimension_numbers = #tpu.dot_dimension_numbers<[2], [1], [1], [2], [0, 0, 0, 1, 1, 2], [0], [0]>} : vector<4x16x32xbf16>, vector<4x32x128xbf16>, vector<4x16x128xf32> -> vector<4x16x128xf32>
    %cst_39 = arith.constant dense<0.000000e+00> : vector<16x128xf32>
    %111 = vector.multi_reduction <add>, %110, %cst_39 [0] : vector<4x16x128xf32> to vector<16x128xf32>
    %c0_40 = arith.constant 0 : index
    %c0_41 = arith.constant 0 : index
    %c0_42 = arith.constant 0 : index
    %112 = vector.load %arg13[%c0_40, %c0_41, %c0_42] : memref<1x1x128xf32, #tpu.memory_space<vmem>>, vector<1x1x128xf32>
    %113 = vector.shape_cast %112 : vector<1x1x128xf32> to vector<1x128xf32>
    %114 = vector.broadcast %113 : vector<1x128xf32> to vector<16x128xf32>
    %115 = arith.addf %111, %114 : vector<16x128xf32>
    %c0_43 = arith.constant 0 : index
    %c0_44 = arith.constant 0 : index
    %c0_45 = arith.constant 0 : index
    %116 = vector.load %arg14[%c0_43, %c0_44, %c0_45] : memref<1x128x512xbf16, #tpu.memory_space<vmem>>, vector<1x128x512xbf16>
    %117 = vector.shape_cast %116 : vector<1x128x512xbf16> to vector<128x512xbf16>
    %cst_46 = arith.constant dense<0.000000e+00> : vector<16x512xf32>
    %118 = tpu.matmul %30, %117, %cst_46 {dimension_numbers = #tpu.dot_dimension_numbers<[1], [0], [0], [1], [0, 0, 1, 1], [], []>} : vector<16x128xbf16>, vector<128x512xbf16>, vector<16x512xf32> -> vector<16x512xf32>
    %c0_47 = arith.constant 0 : index
    %c0_48 = arith.constant 0 : index
    %c0_49 = arith.constant 0 : index
    %119 = vector.load %arg15[%c0_47, %c0_48, %c0_49] : memref<1x1x512xf32, #tpu.memory_space<vmem>>, vector<1x1x512xf32>
    %120 = vector.shape_cast %119 : vector<1x1x512xf32> to vector<1x512xf32>
    %121 = vector.broadcast %120 : vector<1x512xf32> to vector<16x512xf32>
    %122 = arith.addf %118, %121 : vector<16x512xf32>
    %cst_50 = arith.constant 5.000000e-01 : f32
    %123 = vector.broadcast %cst_50 : f32 to vector<16x512xf32>
    %124 = arith.mulf %123, %122 : vector<16x512xf32>
    %125 = arith.mulf %122, %122 : vector<16x512xf32>
    %126 = arith.mulf %125, %122 : vector<16x512xf32>
    %cst_51 = arith.constant 4.471500e-02 : f32
    %127 = vector.broadcast %cst_51 : f32 to vector<16x512xf32>
    %128 = arith.mulf %127, %126 : vector<16x512xf32>
    %129 = arith.addf %122, %128 : vector<16x512xf32>
    %cst_52 = arith.constant 0.797884583 : f32
    %130 = vector.broadcast %cst_52 : f32 to vector<16x512xf32>
    %131 = arith.mulf %130, %129 : vector<16x512xf32>
    %132 = math.tanh %131 : vector<16x512xf32>
    %cst_53 = arith.constant 1.000000e+00 : f32
    %133 = vector.broadcast %cst_53 : f32 to vector<16x512xf32>
    %134 = arith.addf %133, %132 : vector<16x512xf32>
    %135 = arith.mulf %124, %134 : vector<16x512xf32>
    %136 = arith.truncf %135 : vector<16x512xf32> to vector<16x512xbf16>
    %c0_54 = arith.constant 0 : index
    %c0_55 = arith.constant 0 : index
    %c0_56 = arith.constant 0 : index
    %137 = vector.load %arg16[%c0_54, %c0_55, %c0_56] : memref<1x512x128xbf16, #tpu.memory_space<vmem>>, vector<1x512x128xbf16>
    %138 = vector.shape_cast %137 : vector<1x512x128xbf16> to vector<512x128xbf16>
    %cst_57 = arith.constant dense<0.000000e+00> : vector<16x128xf32>
    %139 = tpu.matmul %136, %138, %cst_57 {dimension_numbers = #tpu.dot_dimension_numbers<[1], [0], [0], [1], [0, 0, 1, 1], [], []>} : vector<16x512xbf16>, vector<512x128xbf16>, vector<16x128xf32> -> vector<16x128xf32>
    %c0_58 = arith.constant 0 : index
    %c0_59 = arith.constant 0 : index
    %c0_60 = arith.constant 0 : index
    %140 = vector.load %arg17[%c0_58, %c0_59, %c0_60] : memref<1x1x128xf32, #tpu.memory_space<vmem>>, vector<1x1x128xf32>
    %141 = vector.shape_cast %140 : vector<1x1x128xf32> to vector<1x128xf32>
    %142 = vector.broadcast %141 : vector<1x128xf32> to vector<16x128xf32>
    %143 = arith.addf %139, %142 : vector<16x128xf32>
    %144 = arith.addf %143, %115 : vector<16x128xf32>
    %145 = arith.addf %144, %3 : vector<16x128xf32>
    %c0_61 = arith.constant 0 : index
    %c0_62 = arith.constant 0 : index
    %146 = vector.load %arg19[%c0_61, %c0_62] : memref<16x128xf32, #tpu.memory_space<vmem>>, vector<16x128xf32>
    tpu.vector_store %arg19[%c0_61, %c0_62], %145 {strides = array<i32>} : memref<16x128xf32, #tpu.memory_space<vmem>>, vector<16x128xf32>,
    %c1_i32 = arith.constant 1 : i32
    %147 = arith.cmpi eq, %arg0, %c1_i32 : i32
    %148 = arith.extui %147 : i1 to i32
    %c0_i32_63 = arith.constant 0 : i32
    %149 = arith.cmpi ne, %148, %c0_i32_63 : i32
    scf.if %149 {
      %cst_64 = arith.constant dense<0.000000e+00> : vector<16xf32>
      %150 = vector.multi_reduction <add>, %145, %cst_64 [1] : vector<16x128xf32> to vector<16xf32>
      %151 = vector.shape_cast %150 : vector<16xf32> to vector<16x1xf32>
      %cst_65 = arith.constant 1.280000e+02 : f32
      %152 = vector.broadcast %cst_65 : f32 to vector<16x1xf32>
      %153 = arith.divf %151, %152 : vector<16x1xf32>
      %154 = vector.broadcast %153 : vector<16x1xf32> to vector<16x128xf32>
      %155 = arith.subf %145, %154 : vector<16x128xf32>
      %156 = arith.mulf %155, %155 : vector<16x128xf32>
      %cst_66 = arith.constant dense<0.000000e+00> : vector<16xf32>
      %157 = vector.multi_reduction <add>, %156, %cst_66 [1] : vector<16x128xf32> to vector<16xf32>
      %158 = vector.shape_cast %157 : vector<16xf32> to vector<16x1xf32>
      %cst_67 = arith.constant 1.280000e+02 : f32
      %159 = vector.broadcast %cst_67 : f32 to vector<16x1xf32>
      %160 = arith.divf %158, %159 : vector<16x1xf32>
      %161 = vector.broadcast %153 : vector<16x1xf32> to vector<16x128xf32>
      %162 = arith.subf %145, %161 : vector<16x128xf32>
      %cst_68 = arith.constant 9.99999974E-6 : f32
      %163 = vector.broadcast %cst_68 : f32 to vector<16x1xf32>
      %164 = arith.addf %160, %163 : vector<16x1xf32>
      %165 = math.rsqrt %164 : vector<16x1xf32>
      %166 = vector.broadcast %165 : vector<16x1xf32> to vector<16x128xf32>
      %167 = arith.mulf %162, %166 : vector<16x128xf32>
      %c0_69 = arith.constant 0 : index
      %c0_70 = arith.constant 0 : index
      %168 = vector.load %arg6[%c0_69, %c0_70] : memref<1x128xf32, #tpu.memory_space<vmem>>, vector<1x128xf32>
      %169 = vector.broadcast %168 : vector<1x128xf32> to vector<16x128xf32>
      %170 = arith.mulf %167, %169 : vector<16x128xf32>
      %c0_71 = arith.constant 0 : index
      %c0_72 = arith.constant 0 : index
      %171 = vector.load %arg7[%c0_71, %c0_72] : memref<1x128xf32, #tpu.memory_space<vmem>>, vector<1x128xf32>
      %172 = vector.broadcast %171 : vector<1x128xf32> to vector<16x128xf32>
      %173 = arith.addf %170, %172 : vector<16x128xf32>
      %c0_73 = arith.constant 0 : index
      %c0_74 = arith.constant 0 : index
      %174 = vector.load %arg18[%c0_73, %c0_74] : memref<16x128xf32, #tpu.memory_space<vmem>>, vector<16x128xf32>
      tpu.vector_store %arg18[%c0_73, %c0_74], %173 {strides = array<i32>} : memref<16x128xf32, #tpu.memory_space<vmem>>, vector<16x128xf32>,
    } else {
    }
    return
  }
  func.func @transform_0(%arg0: i32) -> (i32, i32) {
    %c0_i32 = arith.constant 0 : i32
    %c0_i32_0 = arith.constant 0 : i32
    %c0_i32_1 = arith.constant 0 : i32
    return %c0_i32, %c0_i32_0 : i32, i32
  }
  func.func @transform_1(%arg0: i32) -> (i32, i32) {
    %c0_i32 = arith.constant 0 : i32
    %c0_i32_0 = arith.constant 0 : i32
    %c0_i32_1 = arith.constant 0 : i32
    return %c0_i32, %c0_i32_0 : i32, i32
  }
  func.func @transform_2(%arg0: i32) -> (i32, i32) {
    %c0_i32 = arith.constant 0 : i32
    %c0_i32_0 = arith.constant 0 : i32
    %c0_i32_1 = arith.constant 0 : i32
    return %c0_i32, %c0_i32_0 : i32, i32
  }
  func.func @transform_3(%arg0: i32) -> (i32, i32) {
    %c0_i32 = arith.constant 0 : i32
    %c0_i32_0 = arith.constant 0 : i32
    %c0_i32_1 = arith.constant 0 : i32
    return %c0_i32, %c0_i32_0 : i32, i32
  }
  func.func @transform_4(%arg0: i32) -> (i32, i32) {
    %c0_i32 = arith.constant 0 : i32
    %c0_i32_0 = arith.constant 0 : i32
    %c0_i32_1 = arith.constant 0 : i32
    return %c0_i32, %c0_i32_0 : i32, i32
  }
  func.func @transform_5(%arg0: i32) -> (i32, i32) {
    %c0_i32 = arith.constant 0 : i32
    %c0_i32_0 = arith.constant 0 : i32
    %c0_i32_1 = arith.constant 0 : i32
    return %c0_i32, %c0_i32_0 : i32, i32
  }
  func.func @transform_6(%arg0: i32) -> (i32, i32) {
    %c0_i32 = arith.constant 0 : i32
    %c0_i32_0 = arith.constant 0 : i32
    %c0_i32_1 = arith.constant 0 : i32
    return %c0_i32, %c0_i32_0 : i32, i32
  }
  func.func @transform_7(%arg0: i32) -> (i32, i32, i32) {
    %c0_i32 = arith.constant 0 : i32
    %c0_i32_0 = arith.constant 0 : i32
    %c0_i32_1 = arith.constant 0 : i32
    return %arg0, %c0_i32, %c0_i32_0 : i32, i32, i32
  }
  func.func @transform_8(%arg0: i32) -> (i32, i32, i32) {
    %c0_i32 = arith.constant 0 : i32
    %c0_i32_0 = arith.constant 0 : i32
    %c0_i32_1 = arith.constant 0 : i32
    return %arg0, %c0_i32, %c0_i32_0 : i32, i32, i32
  }
  func.func @transform_9(%arg0: i32) -> (i32, i32, i32) {
    %c0_i32 = arith.constant 0 : i32
    %c0_i32_0 = arith.constant 0 : i32
    %c0_i32_1 = arith.constant 0 : i32
    return %arg0, %c0_i32, %c0_i32_0 : i32, i32, i32
  }
  func.func @transform_10(%arg0: i32) -> (i32, i32, i32) {
    %c0_i32 = arith.constant 0 : i32
    %c0_i32_0 = arith.constant 0 : i32
    %c0_i32_1 = arith.constant 0 : i32
    return %arg0, %c0_i32, %c0_i32_0 : i32, i32, i32
  }
  func.func @transform_11(%arg0: i32) -> (i32, i32, i32, i32) {
    %c0_i32 = arith.constant 0 : i32
    %c0_i32_0 = arith.constant 0 : i32
    %c0_i32_1 = arith.constant 0 : i32
    %c0_i32_2 = arith.constant 0 : i32
    return %arg0, %c0_i32, %c0_i32_0, %c0_i32_1 : i32, i32, i32, i32
  }
  func.func @transform_12(%arg0: i32) -> (i32, i32, i32) {
    %c0_i32 = arith.constant 0 : i32
    %c0_i32_0 = arith.constant 0 : i32
    %c0_i32_1 = arith.constant 0 : i32
    return %arg0, %c0_i32, %c0_i32_0 : i32, i32, i32
  }
  func.func @transform_13(%arg0: i32) -> (i32, i32, i32) {
    %c0_i32 = arith.constant 0 : i32
    %c0_i32_0 = arith.constant 0 : i32
    %c0_i32_1 = arith.constant 0 : i32
    return %arg0, %c0_i32, %c0_i32_0 : i32, i32, i32
  }
  func.func @transform_14(%arg0: i32) -> (i32, i32, i32) {
    %c0_i32 = arith.constant 0 : i32
    %c0_i32_0 = arith.constant 0 : i32
    %c0_i32_1 = arith.constant 0 : i32
    return %arg0, %c0_i32, %c0_i32_0 : i32, i32, i32
  }
  func.func @transform_15(%arg0: i32) -> (i32, i32, i32) {
    %c0_i32 = arith.constant 0 : i32
    %c0_i32_0 = arith.constant 0 : i32
    %c0_i32_1 = arith.constant 0 : i32
    return %arg0, %c0_i32, %c0_i32_0 : i32, i32, i32
  }
  func.func @transform_16(%arg0: i32) -> (i32, i32, i32) {
    %c0_i32 = arith.constant 0 : i32
    %c0_i32_0 = arith.constant 0 : i32
    %c0_i32_1 = arith.constant 0 : i32
    return %arg0, %c0_i32, %c0_i32_0 : i32, i32, i32
  }
  func.func @transform_17(%arg0: i32) -> (i32, i32) {
    %c0_i32 = arith.constant 0 : i32
    %c0_i32_0 = arith.constant 0 : i32
    %c0_i32_1 = arith.constant 0 : i32
    return %c0_i32, %c0_i32_0 : i32, i32
  }
}

</mosaic_0001>

<bundles_post_ra>
// kernel: tile.19
= control target key start
LH: loop header
LB: loop body
LE: loop exit
PB: predicated region body
PF: predicated region fallthrough
CT: control target
= control target key end

     0   :  { %vm82_vm0 = vcmask 1047556   ;;  %vm84_vm1 = vcmask 261120   ;;  %s195_s9 = smov 96   ;;  %s196_s14 = smov 32   ;;  %vm103_vm2 = vcmask 1048320   ;;  %vm124_vm3 = vcmask 785920   ;;  %s289_s0 = inlined_call_operand.vmem [shape: f32[16,4,32], index: 0, kind: input, shape index: {}]   ;;  %s290_s1 = inlined_call_operand.vmem [shape: f32[16,128], index: 1, kind: output, shape index: {}]  }
   0x1   :  { %v180_v0 = vld [vmem:[%s289_s0 + $0x1c] sm:$0xf]  ;;  %v181_v1 = vld [vmem:[%s289_s0 + $0x18] sm:$0xf]  ;;  %v182_v2 = vld [vmem:[%s289_s0 + $0x14] sm:$0xf] }
   0x2   :  { %48 = vst [vmem:[#allocation0 + $0x38] sm:$0xf] %v180_v0  ;;  %53 = vst [vmem:[#allocation0 + $0x30] sm:$0xf] %v181_v1  ;;  %v183_v3 = vld [vmem:[%s289_s0 + $0x10] sm:$0xf] }
   0x3   :  { %58 = vst [vmem:[#allocation0 + $0x28] sm:$0xf] %v182_v2  ;;  %v184_v4 = vld [vmem:[%s289_s0 + $0xc] sm:$0xf]  ;;  %v185_v5 = vld [vmem:[%s289_s0 + $0x8] sm:$0xf] }
   0x4   :  { %63 = vst [vmem:[#allocation0 + $0x20] sm:$0xf] %v183_v3  ;;  %68 = vst [vmem:[#allocation0 + $0x18] sm:$0xf] %v184_v4  ;;  %v186_v6 = vld [vmem:[%s289_s0 + $0x4] sm:$0xf] }
   0x5   :  { %73 = vst [vmem:[#allocation0 + $0x10] sm:$0xf] %v185_v5  ;;  %v78_v7 = vld [vmem:[%s289_s0] sm:$0xf]  ;;  %77 = vst [vmem:[#allocation0 + $0x8] sm:$0xf] %v186_v6 }
   0x6   :  { %79 = vst [vmem:[#allocation0] sm:$0xf] %v78_v7  ;;  %v172_v8 = vld [vmem:[%s289_s0 + $0x3c] sm:$0xf]  ;;  %v173_v9 = vld [vmem:[%s289_s0 + $0x38] sm:$0xf] }
   0x7   :  { %8 = vst [vmem:[#allocation0 + $0x78] sm:$0xf] %v172_v8  ;;  %13 = vst [vmem:[#allocation0 + $0x70] sm:$0xf] %v173_v9  ;;  %v174_v10 = vld [vmem:[%s289_s0 + $0x34] sm:$0xf] }
   0x8   :  { %v175_v11 = vld [vmem:[%s289_s0 + $0x30] sm:$0xf]  ;;  %v176_v12 = vld [vmem:[%s289_s0 + $0x2c] sm:$0xf]  ;;  %18 = vst [vmem:[#allocation0 + $0x68] sm:$0xf] %v174_v10 }
   0x9   :  { %23 = vst [vmem:[#allocation0 + $0x60] sm:$0xf] %v175_v11  ;;  %28 = vst [vmem:[#allocation0 + $0x58] sm:$0xf] %v176_v12  ;;  %v177_v13 = vld [vmem:[%s289_s0 + $0x28] sm:$0xf] }
   0xa   :  { %v178_v14 = vld [vmem:[%s289_s0 + $0x24] sm:$0xf]  ;;  %v179_v15 = vld [vmem:[%s289_s0 + $0x20] sm:$0xf]  ;;  %33 = vst [vmem:[#allocation0 + $0x50] sm:$0xf] %v177_v13 }
   0xb   :  { %38 = vst [vmem:[#allocation0 + $0x48] sm:$0xf] %v178_v14  ;;  %43 = vst [vmem:[#allocation0 + $0x40] sm:$0xf] %v179_v15  ;;  %s194_s0 = smov 64   ;;  %vm145_vm4 = vcmask 523520  }
   0xc   :  { %v119_v16 = vld [vmem:[#allocation0 + $0x2] ss:$8 sm:$0xf0]   ;;  %v98_v17 = vld [vmem:[#allocation0 + $0x3] ss:$8 sm:$0xf0]  }
   0xd   :  { %v117_v18 = vld [vmem:[#allocation0 + $0x2] ss:$8 sm:$0xf]   ;;  %v96_v19 = vld [vmem:[#allocation0 + $0x3] ss:$8 sm:$0xf]  }
   0xe   :  { %v121_v20 = vsel %vm82_vm0, %v119_v16, %v117_v18  ;;  %v100_v21 = vsel %vm82_vm0, %v98_v17, %v96_v19  ;;  %v138_v24 = vld [vmem:[#allocation0 + $0x1] ss:$8 sm:$0xf]   ;;  %v80_v32 = vld [vmem:[#allocation0] ss:$8 sm:$0xf]  }
   0xf   :  { %122 = vrot.lane.b32.xlu1 %v121_v20, %s194_s0  ;;  %101 = vrot.lane.b32.xlu0 %v100_v21, %s195_s9  ;;  %v140_v25 = vld [vmem:[#allocation0 + $0x1] ss:$8 sm:$0xf0]   ;;  %v81_v33 = vld [vmem:[#allocation0] ss:$8 sm:$0xf0]  }
  0x10   :  { %v129_v22 = vld [vmem:[#allocation0 + $0x42] ss:$8 sm:$0xf0]   ;;  %v108_v23 = vld [vmem:[#allocation0 + $0x43] ss:$8 sm:$0xf0]   ;;  %v83_v34 = vsel %vm82_vm0, %v81_v33, %v80_v32  ;;  %v142_v38 = vsel %vm82_vm0, %v140_v25, %v138_v24 }
  0x11   :  { %v150_v31 = vld [vmem:[#allocation0 + $0x41] ss:$8 sm:$0xf0]   ;;  %v89_v36 = vld [vmem:[#allocation0 + $0x40] ss:$8 sm:$0xf0]  }
  0x12   :  { %v127_v26 = vld [vmem:[#allocation0 + $0x42] ss:$8 sm:$0xf]   ;;  %v106_v27 = vld [vmem:[#allocation0 + $0x43] ss:$8 sm:$0xf]  }
  0x13   :  { %v131_v28 = vsel %vm82_vm0, %v129_v22, %v127_v26  ;;  %v110_v29 = vsel %vm82_vm0, %v108_v23, %v106_v27  ;;  %v148_v30 = vld [vmem:[#allocation0 + $0x41] ss:$8 sm:$0xf]   ;;  %v87_v35 = vld [vmem:[#allocation0 + $0x40] ss:$8 sm:$0xf]  }
  0x14   :  { %132 = vrot.lane.b32.xlu1 %v131_v28, %s194_s0  ;;  %111 = vrot.lane.b32.xlu0 %v110_v29, %s195_s9  ;;  %v152_v37 = vsel %vm82_vm0, %v150_v31, %v148_v30  ;;  %85 = vst.msk [vmem:[%s290_s1] sm:$0xff] %vm84_vm1, %v83_v34   ;;  %v91_v39 = vsel %vm82_vm0, %v89_v36, %v87_v35 }
  0x15   :  { %187 = vst.msk [vmem:[%s290_s1 + $0x8] sm:$0xff] %vm84_vm1, %v91_v39  }
  0x18   :  { %153 = vrot.lane.b32.xlu1 %v152_v37, %s196_s14  ;;  %143 = vrot.lane.b32.xlu0 %v142_v38, %s196_s14 }
  0x81   :  { %v123_v40 = vpop.permute.xlu1 %122   ;;  %v102_v41 = vpop.permute.xlu0 %101  }
  0x82   :  { %104 = vst.msk [vmem:[%s290_s1] sm:$0xff] %vm103_vm2, %v102_v41  }
  0x83   :  { %125 = vst.msk [vmem:[%s290_s1] sm:$0xff] %vm124_vm3, %v123_v40  }
  0x86   :  { %v133_v42 = vpop.permute.xlu1 %132   ;;  %v112_v43 = vpop.permute.xlu0 %111  }
  0x87   :  { %188 = vst.msk [vmem:[%s290_s1 + $0x8] sm:$0xff] %vm103_vm2, %v112_v43  }
  0x88   :  { %189 = vst.msk [vmem:[%s290_s1 + $0x8] sm:$0xff] %vm124_vm3, %v133_v42  }
  0x8a   :  { %v154_v44 = vpop.permute.xlu1 %153   ;;  %v144_v45 = vpop.permute.xlu0 %143  }
  0x8b   :  { %190 = vst.msk [vmem:[%s290_s1 + $0x8] sm:$0xff] %vm145_vm4, %v154_v44   ;;  %146 = vst.msk [vmem:[%s290_s1] sm:$0xff] %vm145_vm4, %v144_v45  }

// kernel: phi_model_forward.1
= control target key start
LH: loop header
LB: loop body
LE: loop exit
PB: predicated region body
PF: predicated region fallthrough
CT: control target
= control target key end

     0   :  { %s4213_s0 = inlined_call_operand.vmem [shape: f32[16,128], index: 0, kind: input, shape index: {}]   ;;  %s4214_s1 = inlined_call_operand.vmem [shape: f32[16,128], index: 1, kind: input, shape index: {}]   ;;  %s4215_s2 = inlined_call_operand.vmem [shape: f32[16,128], index: 2, kind: input, shape index: {}]   ;;  %s4216_s3 = inlined_call_operand.vmem [shape: f32[16,128], index: 3, kind: input, shape index: {}]   ;;  %s4217_s4 = inlined_call_operand.vmem [shape: f32[16,16], index: 4, kind: input, shape index: {}]   ;;  %s4218_s5 = inlined_call_operand.vmem [shape: f32[1,128], index: 5, kind: input, shape index: {}]   ;;  %s4219_s6 = inlined_call_operand.vmem [shape: f32[1,128], index: 6, kind: input, shape index: {}]   ;;  %s4220_s7 = inlined_call_operand.vmem [shape: f32[2,1,128], index: 7, kind: input, shape index: {}]   ;;  %s4221_s8 = inlined_call_operand.vmem [shape: f32[2,1,128], index: 8, kind: input, shape index: {}]   ;;  %s4222_s9 = inlined_call_operand.vmem [shape: bf16[2,128,384], index: 9, kind: input, shape index: {}]   ;;  %s4223_s10 = inlined_call_operand.vmem [shape: f32[2,1,384], index: 10, kind: input, shape index: {}]   ;;  %s4224_s11 = inlined_call_operand.hbm [shape: bf16[2,4,32,128], index: 11, kind: input, shape index: {}]   ;;  %s4225_s12 = inlined_call_operand.vmem [shape: f32[2,1,128], index: 12, kind: input, shape index: {}]   ;;  %s4226_s13 = inlined_call_operand.vmem [shape: bf16[2,128,512], index: 13, kind: input, shape index: {}]   ;;  %s4227_s14 = inlined_call_operand.vmem [shape: f32[2,1,512], index: 14, kind: input, shape index: {}]   ;;  %s4228_s15 = inlined_call_operand.hbm [shape: bf16[2,512,128], index: 15, kind: input, shape index: {}]   ;;  %s4229_s16 = inlined_call_operand.vmem [shape: f32[2,1,128], index: 16, kind: input, shape index: {}]   ;;  %s4230_s17 = inlined_call_operand.hbm [shape: f32[16,128], index: 17, kind: output, shape index: {}]  }
   0x1   :  { %4239 = sst [smem:[#allocation16_spill]] %s4213_s0 }
   0x2   :  { %4240 = sst [smem:[#allocation17_spill]] %s4214_s1 }
   0x3   :  { %4241 = sst [smem:[#allocation18_spill]] %s4218_s5 }
   0x4   :  { %4242 = sst [smem:[#allocation19_spill]] %s4219_s6 }
   0x5   :  { %4243 = sst [smem:[#allocation20_spill]] %s4224_s11 }
   0x6   :  { %4244 = sst [smem:[#allocation21_spill]] %s4225_s12 }
   0x7   :  { %4245 = sst [smem:[#allocation22_spill]] %s4228_s15 }
   0x8   :  { %4246 = sst [smem:[#allocation23_spill]] %s4230_s17 }
   0x9   :  { %22 = vsyncpa [#allocation4], 0 }
   0xa   :  { %24 = vsyncpa [#allocation4 + $0x1], 0 }
   0xb   :  { %25 = vsyncpa [#allocation7], 0 }
   0xc   :  { %27 = vsyncpa [#allocation7 + $0x1], 0 }
   0xd   :  { %28 = vsyncpa [#allocation5], 0  ;;  %s3654_s24 = smov 0   ;;  %s3656_s25 = smov 0  }
   0xe   :  { %s3658_s26 = smov 0   ;;  %s3660_s27 = smov 0  }
   0xf LB: > { %4247 = sst [smem:[#allocation12_spill]] %s3540_s25  ;;  %s3673_s28 = sadd.s32 4294967295, %s3548_s27   ;;  %s3548_s27 = sphi %s3660_s27, %s4269_s27   ;;  %s3544_s26 = sphi %s3658_s26, %s4272_s26   ;;  %s3540_s25 = sphi %s3656_s25, %s4271_s25   ;;  %s3536_s24 = sphi %s3654_s24, %s4270_s24  }
  0x10   : > { %4248 = sst [smem:[#allocation13_spill]] %s3544_s26  ;;  %s3676_s29 = sadd.s32 1, %s3548_s27  }
  0x11   : > { %4249 = sst [smem:[#allocation14_spill]] %s3676_s29  ;;  %s289_s0 = ssub.s32 %s3548_s27, %s3676_s29 }
  0x12   : > { %s292_s30 = sadd.s32 1, %s3544_s26  ;;  %p290_p0 = scmp.eq.s32.totalorder %s289_s0, 0 }
  0x13   : > { %p299_p1 = scmp.ne.s32.totalorder %s3544_s26, %s3540_s25  ;;  %p300_p2 = scmp.eq.s32.totalorder %s3548_s27, 0 }
  0x14   : > { %p305_p3 = scmp.ne.s32.totalorder %s3540_s25, %s3536_s24  ;;  %p306_p5 = scmp.eq.s32.totalorder %s3673_s28, 0 }
  0x15   : > { %s3686_s18 = scalar_select %p290_p0, %s3544_s26, %s292_s30  }
  0x16   : > { %p301_p4 = por %p300_p2, %p299_p1  ;;  %p3150_p6 = scmp.lt.s32.totalorder %s3548_s27, 2 }
  0x17   : > { %4250 = sst [smem:[#allocation15_spill]] %s3686_s18  ;;  %p3690_p7 = por %p306_p5, %p305_p3 }
  0x18   : > { %s3695_s1 = sand.u32 1, %s3544_s26   ;;  %s2949_s21 = sshll.u32 %s3548_s27, 10 }
  0x19   : > { %s4251_s19 = scalar_select %p3690_p7, 1, 0 }
  0x1a   : > { %s2816_s20 = sshll.u32 %s3695_s1, 6  ;;  %s4252_s11 = sld [smem:[#allocation20_spill]] }
  0x1b   : > { %s532_s24 = scalar_lea.vmem [#allocation3], %s2816_s20  ;;  %p3706_p8 = pnand %p3150_p6, %p301_p4 }
  0x1c   : > { %s539_s30 = sshll.u32 %s532_s24, 4  ;;  %s3704_s30 = int_to_ptr.vmem [resolvable:$true] %s539_s30 }
  0x1d   : > { %p3422_p11 = pneg %p3706_p8 }
  0x20   : > { %s3702_s0 = scalar_lea.hbm %s4252_s11, %s2949_s21  ;;  %s3425_s22 = scalar_lea.hbm %s4252_s11, 2048 }
  0x21   : > { %s3420_s29 = scalar_lea.hbm %s3702_s0, 1024  ;;  %p3426_p0 = scmp.lt.u32.totalorder %s3702_s0, %s4252_s11 }
  0x22   : > { %p3421_p10 = scmp.ne.s32.totalorder %s3702_s0, %s3420_s29  ;;  %p3427_p1 = scmp.lt.u32.totalorder %s3425_s22, %s3420_s29 }
  0x23   : > { %p3429_p3 = scmp.lt.u32.totalorder %s3420_s29, %s3702_s0 }
  0x24   : > { %p3423_p12 = pnand %p3422_p11, %p3421_p10  ;;  %p3428_p2 = por %p3427_p1, %p3426_p0 }
  0x26   : > { %p3424_p13 = pneg %p3423_p12  ;;  %p3430_p4 = por %p3429_p3, %p3428_p2 }
  0x28   : > { %p3431_p5 = pnand %p3430_p4, %p3424_p13 }
  0x2a   : > { %3434 = shalt.err (!%p3431_p5)
}
  0x2b   : > { %s3435_s26 = scalar_lea.vmem %s3704_s30, 1024  ;;  %s3550_s20 = smov [#allocation3]  }
  0x2c   : > { %p3436_p6 = scmp.ne.s32.totalorder %s3704_s30, %s3435_s26  ;;  %s3440_s21 = sshll.u32 %s3550_s20, 4  ;;  %s3441_s21 = int_to_ptr.vmem [resolvable:$false] %s3440_s21 }
  0x2d   : > { %s3442_s23 = scalar_lea.vmem %s3441_s21, 2048  ;;  %p3443_p9 = scmp.lt.s32.totalorder %s3704_s30, %s3441_s21 }
  0x2e   : > { %p3438_p10 = pnand %p3436_p6, %p3422_p11  ;;  %p3444_p0 = scmp.lt.s32.totalorder %s3442_s23, %s3435_s26 }
  0x30   : > { %p3439_p12 = pneg %p3438_p10  ;;  %p3445_p1 = por %p3444_p0, %p3443_p9 }
  0x32   : > { %p3446_p2 = pnand %p3445_p1, %p3439_p12 }
  0x34   : > { %3449 = shalt.err (!%p3446_p2)
}
  0x35   : > { %s3551_s29 = smov 64   ;;  %s3552_s22 = smov 4  }
  0x36   : > { %s4254_s26 = scalar_lea.sflag [#allocation4], %s3695_s1  ;;  %p595_p9 = scmp.lt.s32.totalorder %s3548_s27, 3 }
  0x37   : > { %3146 = dma.hbm_to_vmem [thread:$0]  (!%p3706_p8), %s3702_s0, 1024, %s3704_s30, %s4254_s26, %s3551_s29, %s3551_s29, %s3552_s22  }
  0x38   : > { %s2819_s24 = sshll.u32 %s3695_s1, 8  ;;  %s2950_s20 = sshll.u32 %s3548_s27, 12 }
  0x39   : > { %p4255_p13 = scmp.ge.s32.totalorder %s3548_s27, 1  ;;  %s4257_s15 = sld [smem:[#allocation22_spill]] }
  0x3a   : > { %s574_s6 = scalar_lea.vmem [#allocation6], %s2819_s24  ;;  %s571_s0 = scalar_lea.sflag [#allocation7], %s3695_s1 }
  0x3b   : > { %p3747_p3 = pnand %p4255_p13, %p595_p9  ;;  %s581_s5 = sshll.u32 %s574_s6, 4  ;;  %s3756_s5 = int_to_ptr.vmem [resolvable:$true] %s581_s5 }
  0x3f   : > { %s3754_s17 = scalar_lea.hbm %s4257_s15, %s2950_s20  ;;  %s3455_s11 = scalar_lea.hbm %s4257_s15, 8192 }
  0x40   : > { %s3450_s30 = scalar_lea.hbm %s3754_s17, 4096  ;;  %p3456_p10 = scmp.lt.u32.totalorder %s3754_s17, %s4257_s15 }
  0x41   : > { %p3451_p4 = scmp.ne.s32.totalorder %s3754_s17, %s3450_s30  ;;  %p3457_p12 = scmp.lt.u32.totalorder %s3455_s11, %s3450_s30 }
  0x42   : > { %p3459_p1 = scmp.lt.u32.totalorder %s3450_s30, %s3754_s17 }
  0x43   : > { %p3453_p5 = pnand %p3451_p4, %p3422_p11  ;;  %p3458_p0 = por %p3457_p12, %p3456_p10 }
  0x45   : > { %p3454_p6 = pneg %p3453_p5  ;;  %p3460_p2 = por %p3459_p1, %p3458_p0 }
  0x47   : > { %p3461_p9 = pnand %p3460_p2, %p3454_p6 }
  0x49   : > { %3464 = shalt.err (!%p3461_p9)
}
  0x4a   : > { %s3465_s6 = scalar_lea.vmem %s3756_s5, 4096  ;;  %s3553_s24 = smov [#allocation6]  }
  0x4b   : > { %p3466_p13 = scmp.ne.s32.totalorder %s3756_s5, %s3465_s6  ;;  %s3470_s27 = sshll.u32 %s3553_s24, 4  ;;  %s3471_s27 = int_to_ptr.vmem [resolvable:$false] %s3470_s27 }
  0x4c   : > { %s3472_s26 = scalar_lea.vmem %s3471_s27, 8192  ;;  %p3473_p7 = scmp.lt.s32.totalorder %s3756_s5, %s3471_s27 }
  0x4d   : > { %p3468_p4 = pnand %p3466_p13, %p3422_p11  ;;  %p3474_p10 = scmp.lt.s32.totalorder %s3472_s26, %s3465_s6 }
  0x4f   : > { %p3469_p5 = pneg %p3468_p4  ;;  %p3475_p12 = por %p3474_p10, %p3473_p7 }
  0x51   : > { %p3476_p0 = pnand %p3475_p12, %p3469_p5 }
  0x53   : > { %3479 = shalt.err (!%p3476_p0)
}
  0x54   : > { %3149 = dma.hbm_to_vmem [thread:$0]  (!%p3706_p8), %s3754_s17, 4096, %s3756_s5, %s571_s0, %s3551_s29, %s3551_s29, %s3552_s22  }
  0x55   : > { %599 = sbr.rel (%p3747_p3) target bundleno = 2555 (0x9fb), region = 88  ;;  %s601_s30 = sand.u32 (!%p3747_p3), 1, %s3540_s25  }
  0x56   : > { %s2823_s11 = sshll.u32 (!%p3747_p3), %s601_s30, 6  ;;  %s602_s20 = scalar_lea.sflag (!%p3747_p3), [#allocation4], %s601_s30 }
  0x57   : > { %s3790_s23 = scalar_lea.vmem (!%p3747_p3), [#allocation3], %s2823_s11  ;;  %p4258_p7 = scmp.ne.s32.totalorder (!%p3747_p3), %s4251_s19, 0 }
  0x5c   : > { %3523 = dma.done.wait (%p4258_p7), %s602_s20, 1024  }
  0x5d   : > { %3525 = vsyncadd (%p4258_p7), %s602_s20, 4294966272  ;;  %s2824_s18 = sshll.u32 %s601_s30, 8  ;;  %s611_s1 = scalar_lea.sflag [#allocation7], %s601_s30 }
  0x5e   : > { %s3796_s6 = scalar_lea.vmem [#allocation6], %s2824_s18 }
  0x5f   : > { %3527 = dma.done.wait (%p4258_p7), %s611_s1, 4096  }
  0x60   : > { %3529 = vsyncadd (%p4258_p7), %s611_s1, 4294963200  ;;  %p695_p8 = scmp.lt.s32.totalorder %s3673_s28, 1  ;;  %p2829_p11 = scmp.ne.s32.totalorder %s3673_s28, 0 }
  0x61   : > { %s4260_s1 = sld [smem:[#allocation16_spill]] (!%p2829_p11) }
  0x62   : > { %s3804_s5 = scalar_select %p695_p8, %s3673_s28, 1 }
  0x63   : > { %729 = sbr.rel (%p2829_p11) target bundleno = 106 (0x6a), region = 100 }
  0x64   : > { %s3133_s24 = smul.u32 192, %s3804_s5  ;;  %s2951_s20 = sshll.u32 %s3804_s5, 8 }
  0x65   : > { %s3134_s11 = smul.u32 3, %s3804_s5  ;;  %s3829_s22 = scalar_lea.vmem %s4226_s13, %s2951_s20 }
  0x66   : > { %s3824_s17 = scalar_lea.vmem %s4222_s9, %s3133_s24  ;;  %s2828_s0 = sshll.u32 %s3804_s5, 2 }
  0x67   : > { %s3834_s19 = scalar_lea.vmem %s4223_s10, %s3134_s11  ;;  %s3840_s30 = scalar_lea.vmem %s4227_s14, %s2828_s0  ;;  %v730_v0 = vld [vmem:[%s4260_s1] sm:$0xff] (!%p2829_p11)  ;;  %v731_v1 = vld [vmem:[%s4260_s1 + $0x8] sm:$0xff] (!%p2829_p11) }
  0x68   : > { %s724_s24 = scalar_lea.vmem %s4229_s16, %s3804_s5  ;;  %732 = vst [vmem:[#allocation2] sm:$0xff] (!%p2829_p11), %v730_v0  ;;  %733 = vst [vmem:[#allocation2 + $0x8] sm:$0xff] (!%p2829_p11), %v731_v1 }
  0x6a PF: > { %v3242_v4 = vld [vmem:[%s3824_s17 + $0x4] ss:$12 sps:$4 sm:$0xff]   ;;  %v3244_v5 = vld [vmem:[%s3824_s17] ss:$12 sps:$4 sm:$0xff]   ;;  %v3554_v6 = vmov 0.0   ;;  %v3555_v37 = vmov 0   ;;  %s4262_s27 = scalar_lea.vmem %s4221_s8, %s3804_s5  ;;  %v812_v55 = vlaneseq }
  0x6b   : > { %3033 = vmatprep.subr.bf16.mxu1 %v3554_v6  ;;  %v3245_v7 = vld [vmem:[%s3824_s17 + $0x8] ss:$12 sps:$4 sm:$0xff]   ;;  %955 = vmatprep.subr.bf16.mxu0 %v3242_v4  ;;  %v3248_v17 = vld [vmem:[%s3824_s17 + $0x18] ss:$12 sps:$4 sm:$0xff]   ;;  %v3249_v18 = vld [vmem:[%s3824_s17 + $0x20] ss:$12 sps:$4 sm:$0xff]  }
  0x6c   : > { %v3246_v8 = vld [vmem:[%s3824_s17 + $0x1c] ss:$12 sps:$4 sm:$0xff]   ;;  %956 = vmatpush1.bf16.msra.mxu0 %v3244_v5  ;;  %3034 = vmatpush3.bf16.msra.mxu1 %v3245_v7  ;;  %v3250_v19 = vld [vmem:[%s3824_s17 + $0x34] ss:$12 sps:$4 sm:$0xff]   ;;  %v3253_v21 = vld [vmem:[%s3824_s17 + $0x38] ss:$12 sps:$4 sm:$0xff]  }
  0x6d   : > { %957 = vmatprep.subr.bf16.mxu0 %v3246_v8  ;;  %3035 = vmatprep.subr.bf16.mxu1 %v3554_v6  ;;  %v3252_v20 = vld [vmem:[%s3824_s17 + $0x30] ss:$12 sps:$4 sm:$0xff]   ;;  %v3254_v22 = vld [vmem:[%s3824_s17 + $0x4c] ss:$12 sps:$4 sm:$0xff]   ;;  %v3256_v23 = vld [vmem:[%s3824_s17 + $0x48] ss:$12 sps:$4 sm:$0xff]  }
  0x6e   : > { %v3257_v24 = vld [vmem:[%s3824_s17 + $0x50] ss:$12 sps:$4 sm:$0xff]   ;;  %v3260_v26 = vld [vmem:[%s3824_s17 + $0x60] ss:$12 sps:$4 sm:$0xff]   ;;  %v3261_v27 = vld [vmem:[%s3824_s17 + $0x68] ss:$12 sps:$4 sm:$0xff]   ;;  %987 = vmatprep.mubr.bf16.mxu0 %v3555_v37 }
  0x6f   : > { %v734_v2 = vld [vmem:[#allocation2] sm:$0xff]  ;;  %v735_v3 = vld [vmem:[#allocation2 + $0x8] sm:$0xff]  ;;  %v3268_v32 = vld [vmem:[%s3824_s17 + $0x90] ss:$12 sps:$4 sm:$0xff]   ;;  %vm3556_vm0 = vmmov 0   ;;  %v3918_v56 = vshrl.u32 %v812_v55, 7 }
  0x70   : > { %736 = vadd.xlane.f32.xlu0 %v734_v2  ;;  %958 = vmatpush1.bf16.msra.mxu0 %v3248_v17  ;;  %v3258_v25 = vld [vmem:[%s3824_s17 + $0x64] ss:$12 sps:$4 sm:$0xff]   ;;  %v3262_v28 = vld [vmem:[%s3824_s17 + $0x7c] ss:$12 sps:$4 sm:$0xff]   ;;  %v3265_v30 = vld [vmem:[%s3824_s17 + $0x80] ss:$12 sps:$4 sm:$0xff]  }
  0x71   : > { %3036 = vmatpush3.bf16.msra.mxu1 %v3249_v18  ;;  %959 = vmatprep.subr.bf16.mxu0 %v3250_v19  ;;  %v3264_v29 = vld [vmem:[%s3824_s17 + $0x78] ss:$12 sps:$4 sm:$0xff]   ;;  %v3266_v31 = vld [vmem:[%s3824_s17 + $0x94] ss:$12 sps:$4 sm:$0xff]   ;;  %v3273_v36 = vld [vmem:[%s3824_s17 + $0xb0] ss:$12 sps:$4 sm:$0xff]  }
  0x72   : > { %3037 = vmatprep.subr.bf16.mxu1 %v3554_v6  ;;  %v3269_v33 = vld [vmem:[%s3824_s17 + $0x98] ss:$12 sps:$4 sm:$0xff]   ;;  %v3272_v35 = vld [vmem:[%s3824_s17 + $0xa8] ss:$12 sps:$4 sm:$0xff]   ;;  %3049 = vmatprep.mubr.msk.bf16.mxu1 %vm3556_vm0, %v3554_v6  ;;  %v2831_v50 = vld [vmem:[%s4262_s27] ss:$0 sm:$0xff] }
  0x73   : > { %v3270_v34 = vld [vmem:[%s3824_s17 + $0xac] ss:$12 sps:$4 sm:$0xff]   ;;  %s4261_s17 = scalar_lea.vmem %s4220_s7, %s3804_s5  ;;  %v818_v57 = vsub.s32 1, %v3918_v56  ;;  %v810_v58 = vld [vmem:[%s3834_s19] sm:$0x7]  ;;  %v822_v59 = vsub.s32 2, %v3918_v56 }
  0x74   : > { %738 = vadd.xlane.f32.xlu0 %v735_v3  ;;  %960 = vmatpush1.bf16.msra.mxu0 %v3252_v20  ;;  %v2830_v46 = vld [vmem:[%s4261_s17] ss:$0 sm:$0xff]  ;;  %v814_v60 = vsub.s32 0, %v3918_v56  ;;  %s3557_s19 = smov 8   ;;  %s3558_s26 = smov 120   ;;  %vm1157_vm1 = vcmask 261120  }
  0x75   : > { %3038 = vmatpush3.bf16.msra.mxu1 %v3253_v21  ;;  %961 = vmatprep.subr.bf16.mxu0 %v3254_v22  ;;  %v819_v61 = vrot.slane %v810_v58, %v818_v57  ;;  %v823_v62 = vrot.slane %v810_v58, %v822_v59  ;;  %v1041_v18 = vld [vmem:[%s4215_s2] sm:$0xff]  ;;  %s4263_s11 = sld [smem:[#allocation17_spill]]  ;;  %v1042_v21 = vld [vmem:[%s4215_s2 + $0x8] sm:$0xff]  ;;  %s3559_s15 = smov 64   ;;  %vm1346_vm2 = vcmask 130048  }
  0x76   : > { %3039 = vmatprep.subr.bf16.mxu1 %v3554_v6  ;;  %s3560_s20 = smov 96   ;;  %s3561_s25 = smov 32  }
  0x77   : > { %s4264_s21 = sld [smem:[#allocation21_spill]]  ;;  %p2942_p3 = scmp.ne.s32.totalorder %s3673_s28, 1 }
  0x78   : > { %962 = vmatpush1.bf16.msra.mxu0 %v3256_v23 }
  0x79   : > { %3040 = vmatpush3.bf16.msra.mxu1 %v3257_v24  ;;  %963 = vmatprep.subr.bf16.mxu0 %v3258_v25 }
  0x7a   : > { %3041 = vmatprep.subr.bf16.mxu1 %v3554_v6 }
  0x7b   : > { %v1039_v20 = vld [vmem:[%s4263_s11] sm:$0xff]  ;;  %v1040_v23 = vld [vmem:[%s4263_s11 + $0x8] sm:$0xff] }
  0x7c   : > { %964 = vmatpush1.bf16.msra.mxu0 %v3260_v26 }
  0x7d   : > { %3042 = vmatpush3.bf16.msra.mxu1 %v3261_v27  ;;  %965 = vmatprep.subr.bf16.mxu0 %v3262_v28  ;;  %v1043_v28 = vld [vmem:[%s4216_s3] sm:$0xff]  ;;  %s4265_s27 = scalar_lea.vmem %s4264_s21, %s3804_s5 }
  0x7e   : > { %3043 = vmatprep.subr.bf16.mxu1 %v3554_v6 }
  0x80   : > { %966 = vmatpush1.bf16.msra.mxu0 %v3264_v29  ;;  %v1044_v29 = vld [vmem:[%s4216_s3 + $0x8] sm:$0xff] }
  0x81   : > { %3044 = vmatpush3.bf16.msra.mxu1 %v3265_v30  ;;  %967 = vmatprep.subr.bf16.mxu0 %v3266_v31 }
  0x82   : > { %3045 = vmatprep.subr.bf16.mxu1 %v3554_v6 }
  0x84   : > { %968 = vmatpush1.bf16.msra.mxu0 %v3268_v32 }
  0x85   : > { %3046 = vmatpush3.bf16.msra.mxu1 %v3269_v33  ;;  %969 = vmatprep.subr.bf16.mxu0 %v3270_v34 }
  0x86   : > { %3047 = vmatprep.subr.bf16.mxu1 %v3554_v6 }
  0x88   : > { %970 = vmatpush1.bf16.msra.mxu0 %v3272_v35 }
  0x89   : > { %3048 = vmatpush3.bf16.msra.mxu1 %v3273_v36  ;;  %3053 = vmatprep.subr.bf16.mxu0 %v3554_v6 }
  0x8a   : > { %3059 = vmatprep.subr.bf16.mxu1 %v3554_v6 }
  0xfd   : > { %v737_v9 = vpop.xlane.xlu0 %736 }
  0xfe   : > { %v741_v10 = vmul.f32 0.0078125, %v737_v9 }
 0x100   : > { %v3859_v11 = vsub.f32 %v734_v2, %v741_v10 }
 0x101   : > { %v739_v12 = vpop.xlane.xlu0 %738 }
 0x102   : > { %v742_v13 = vmul.f32 0.0078125, %v739_v12  ;;  %v745_v14 = vmul.f32 %v3859_v11, %v3859_v11 }
 0x104   : > { %v3863_v15 = vsub.f32 %v735_v3, %v742_v13  ;;  %747 = vadd.xlane.f32.xlu1 %v745_v14  ;;  %v815_v3 = vrot.slane %v810_v58, %v814_v60 }
 0x106   : > { %v746_v16 = vmul.f32 %v3863_v15, %v3863_v15 }
 0x108   : > { %749 = vadd.xlane.f32.xlu1 %v746_v16 }
 0x191   : > { %v748_v38 = vpop.xlane.xlu1 %747 }
 0x192   : > { %v751_v39 = vmul.f32 0.0078125, %v748_v38 }
 0x194   : > { %v753_v40 = vadd.f32 1e-05, %v751_v39 }
 0x195   : > { %v750_v41 = vpop.xlane.xlu1 %749 }
 0x196   : > { %3362 = vrsqrt.f32 %v753_v40  ;;  %v752_v42 = vmul.f32 0.0078125, %v750_v41 }
 0x198   : > { %v754_v43 = vadd.f32 1e-05, %v752_v42 }
 0x19a   : > { %3364 = vrsqrt.f32 %v754_v43 }
 0x1a0   : > { %v3363_v44 = vpop.eup %3362 }
 0x1a1   : > { %v757_v45 = vmul.f32 %v3363_v44, %v3859_v11 }
 0x1a3   : > { %v766_v49 = vmul.f32 %v2830_v46, %v757_v45 }
 0x1a4   : > { %v3365_v47 = vpop.eup %3364 }
 0x1a5   : > { %v758_v48 = vmul.f32 %v3365_v47, %v3863_v15  ;;  %v775_v52 = vadd.f32 %v2831_v50, %v766_v49 }
 0x1a7   : > { %v767_v51 = vmul.f32 %v2830_v46, %v758_v48 }
 0x1a9   : > { %v776_v53 = vadd.f32 %v2831_v50, %v767_v51 }
 0x1ab   : > { %v3910_v54 = vpack.c.bf16 %v776_v53, %v775_v52 }
 0x1ad   : > { %988 = vmatmul.mubr.bf16.vlgmr.msra.gmra.mrb[0].mxu0 %v3910_v54  ;;  %3050 = vmatmul.mubr.bf16.vlgmr.msra.gmra.mrb[0].mxu1 %v3910_v54 }
 0x1ae   : > { %3055 = vmatprep.mubr.msk.bf16.mxu0 %vm3556_vm0, %v3554_v6  ;;  %3061 = vmatprep.mubr.msk.bf16.mxu1 %vm3556_vm0, %v3554_v6 }
 0x280   : > { %v989_v63 = vpop.f32.mrb[0].mxu0  ;;  %v1032_v0 = vpop.f32.mrb[0].mxu1 }
 0x281   : > { %v991_v1 = vpop.f32.mrb[1].mxu0  ;;  %v3051_v2 = vpop.f32.mrb[1].mxu1  ;;  %v3930_v8 = vadd.f32 %v1032_v0, %v823_v62  ;;  %v990_v14 = vadd.f32 %v989_v63, %v815_v3 }
 0x282   : > { %v992_v4 = vadd.f32 %v991_v1, %v819_v61  ;;  %v993_v5 = vpop.f32.mrb[2].mxu0  ;;  %v1035_v7 = vpop.f32.mrb[2].mxu1 }
 0x283   : > { %v3932_v9 = vadd.f32 %v1035_v7, %v823_v62  ;;  %v995_v10 = vpop.f32.mrb[3].mxu0  ;;  %v3052_v11 = vpop.f32.mrb[3].mxu1  ;;  %v994_v16 = vadd.f32 %v993_v5, %v815_v3  ;;  %v1053_v41 = vmul.f32 %v1039_v20, %v990_v14 }
 0x284   : > { %1063 = vrot.lane.b32.xlu1 %v992_v4, %s3557_s19  ;;  %1067 = vrot.lane.b32.xlu0 %v992_v4, %s3558_s26  ;;  %v996_v15 = vadd.f32 %v995_v10, %v819_v61  ;;  %v1071_v26 = vmul.f32 %v1039_v20, %v992_v4 }
 0x285   : > { %v1151_v12 = vpack.c.bf16 %v3932_v9, %v3930_v8  ;;  %v3939_v13 = vpack.i.bf16 %v3932_v9, %v3930_v8  ;;  %v1054_v48 = vmul.f32 %v1040_v23, %v994_v16  ;;  %v1156_v8 = vld [vmem:[%s4217_s4 + $0x8] sm:$0xff] }
 0x286   : > { %v1072_v31 = vmul.f32 %v1040_v23, %v996_v15 }
 0x288   : > { %1069 = vrot.lane.b32.xlu1 %v996_v15, %s3558_s26  ;;  %1049 = vrot.lane.b32.xlu0 %v990_v14, %s3558_s26 }
 0x28c   : > { %1065 = vrot.lane.b32.xlu1 %v996_v15, %s3557_s19  ;;  %1045 = vrot.lane.b32.xlu0 %v990_v14, %s3557_s19 }
 0x290   : > { %1051 = vrot.lane.b32.xlu1 %v994_v16, %s3558_s26  ;;  %s4266_s26 = sld [smem:[#allocation18_spill]] (!%p2942_p3) }
 0x294   : > { %1047 = vrot.lane.b32.xlu1 %v994_v16, %s3557_s19 }
 0x2f6   : > { %v1064_v17 = vpop.permute.xlu1 %1063  ;;  %v1068_v19 = vpop.permute.xlu0 %1067 }
 0x2f7   : > { %v1073_v22 = vmul.f32 %v1068_v19, %v1041_v18  ;;  %v1077_v33 = vmul.f32 %v1064_v17, %v1043_v28 }
 0x2f9   : > { %v1075_v30 = vadd.f32 %v1073_v22, %v1071_v26 }
 0x2fa   : > { %v1070_v24 = vpop.permute.xlu1 %1069  ;;  %v1050_v25 = vpop.permute.xlu0 %1049 }
 0x2fb   : > { %v1074_v27 = vmul.f32 %v1070_v24, %v1042_v21  ;;  %v1079_v38 = vadd.f32 %v1077_v33, %v1075_v30  ;;  %v1055_v39 = vmul.f32 %v1050_v25, %v1041_v18 }
 0x2fd   : > { %v1076_v34 = vadd.f32 %v1074_v27, %v1072_v31  ;;  %v1057_v47 = vadd.f32 %v1055_v39, %v1053_v41 }
 0x2fe   : > { %v1066_v32 = vpop.permute.xlu1 %1065  ;;  %v1046_v36 = vpop.permute.xlu0 %1045 }
 0x2ff   : > { %v1078_v35 = vmul.f32 %v1066_v32, %v1044_v29  ;;  %v1059_v43 = vmul.f32 %v1046_v36, %v1043_v28  ;;  %v1155_v32 = vld [vmem:[%s4217_s4] sm:$0xff] }
 0x301   : > { %v1080_v40 = vadd.f32 %v1078_v35, %v1076_v34  ;;  %v1061_v51 = vadd.f32 %v1059_v43, %v1057_v47 }
 0x302   : > { %v1052_v42 = vpop.permute.xlu1 %1051 }
 0x303   : > { %v1056_v44 = vmul.f32 %v1052_v42, %v1042_v21  ;;  %v3202_v45 = vpack.i.bf16 %v1080_v40, %v1079_v38  ;;  %v1127_v46 = vpack.c.bf16 %v1080_v40, %v1079_v38  ;;  %v1081_v58 = vmul.f32 0.17677669, %v1061_v51 }
 0x305   : > { %3203 = vrot.lane.b32.xlu1 %v3202_v45, %s3559_s15  ;;  %3198 = vrot.lane.b32.xlu0 %v3202_v45, %s3560_s20  ;;  %v1162_v50 = vsel %vm1157_vm1, %v1127_v46, 0  ;;  %v1058_v52 = vadd.f32 %v1056_v44, %v1054_v48 }
 0x306   : > { %v1048_v49 = vpop.permute.xlu1 %1047  ;;  %3054 = vmatpush3.bf16.xpose.msra.mxu0 %v1162_v50 }
 0x307   : > { %v1060_v53 = vmul.f32 %v1048_v49, %v1044_v29  ;;  %3065 = vmatprep.subr.bf16.mxu0 %v3554_v6 }
 0x309   : > { %v1062_v55 = vadd.f32 %v1060_v53, %v1058_v52  ;;  %3213 = vrot.lane.b32.xlu1 %v3202_v45, %s3561_s25 }
 0x30b   : > { %v1082_v61 = vmul.f32 0.17677669, %v1062_v55 }
 0x30d   : > { %v1103_v62 = vpack.c.bf16 %v1082_v61, %v1081_v58  ;;  %v3222_v63 = vpack.i.bf16 %v1082_v61, %v1081_v58 }
 0x30f   : > { %3223 = vrot.lane.b32.xlu1 %v3222_v63, %s3561_s25  ;;  %3208 = vrot.lane.b32.xlu0 %v3222_v63, %s3560_s20 }
 0x310   : > { %3056 = vmatmul.mubr.msk.bf16.vlgmr.msra.gmra.mrb[4].mxu0 %vm1157_vm1, %v1103_v62 }
 0x311   : > { %3067 = vmatprep.mubr.msk.bf16.mxu0 %vm3556_vm0, %v3554_v6 }
 0x313   : > { %3218 = vrot.lane.b32.xlu0 %v3222_v63, %s3559_s15 }
 0x377   : > { %v3204_v0 = vpop.permute.xlu1 %3203  ;;  %v3199_v1 = vpop.permute.xlu0 %3198 }
 0x378   : > { %v3206_v2 = vunpack.i.h.bf16 %v3204_v0  ;;  %v3205_v3 = vunpack.i.l.bf16 %v3204_v0  ;;  %v3201_v4 = vunpack.i.h.bf16 %v3199_v1  ;;  %v3200_v5 = vunpack.i.l.bf16 %v3199_v1 }
 0x37a   : > { %v1129_v7 = vpack.c.bf16 %v3206_v2, %v3205_v3  ;;  %v1128_v10 = vpack.c.bf16 %v3201_v4, %v3200_v5 }
 0x37b   : > { %v3214_v11 = vpop.permute.xlu1 %3213 }
 0x37c   : > { %v1209_v14 = vsel %vm1157_vm1, %v1128_v10, 0  ;;  %v1256_v15 = vsel %vm1157_vm1, %v1129_v7, 0  ;;  %v3216_v16 = vunpack.i.h.bf16 %v3214_v11  ;;  %v3215_v17 = vunpack.i.l.bf16 %v3214_v11 }
 0x37d   : > { %3060 = vmatpush3.bf16.xpose.msra.mxu1 %v1209_v14  ;;  %3066 = vmatpush3.bf16.xpose.msra.mxu0 %v1256_v15 }
 0x37e   : > { %3071 = vmatprep.subr.bf16.mxu1 %v3554_v6  ;;  %3077 = vmatprep.subr.bf16.mxu0 %v3554_v6  ;;  %v1130_v19 = vpack.c.bf16 %v3216_v16, %v3215_v17 }
 0x380   : > { %v1303_v27 = vsel %vm1157_vm1, %v1130_v19, 0 }
 0x381   : > { %v3209_v18 = vpop.permute.xlu0 %3208  ;;  %v3224_v23 = vpop.permute.xlu1 %3223 }
 0x382   : > { %v3211_v20 = vunpack.i.h.bf16 %v3209_v18  ;;  %v3210_v21 = vunpack.i.l.bf16 %v3209_v18  ;;  %v3226_v28 = vunpack.i.h.bf16 %v3224_v23  ;;  %v3225_v29 = vunpack.i.l.bf16 %v3224_v23 }
 0x384   : > { %v1104_v22 = vpack.c.bf16 %v3211_v20, %v3210_v21  ;;  %v1106_v31 = vpack.c.bf16 %v3226_v28, %v3225_v29 }
 0x385   : > { %v3219_v24 = vpop.permute.xlu0 %3218 }
 0x386   : > { %v3221_v25 = vunpack.i.h.bf16 %v3219_v24  ;;  %v3220_v26 = vunpack.i.l.bf16 %v3219_v24  ;;  %3062 = vmatmul.mubr.msk.bf16.vlgmr.msra.gmra.mrb[4].mxu1 %vm1157_vm1, %v1104_v22 }
 0x387   : > { %3072 = vmatpush3.bf16.xpose.msra.mxu1 %v1303_v27  ;;  %3073 = vmatprep.mubr.msk.bf16.mxu1 %vm3556_vm0, %v3554_v6 }
 0x388   : > { %v1105_v30 = vpack.c.bf16 %v3221_v25, %v3220_v26  ;;  %3083 = vmatprep.subr.bf16.mxu1 %v3554_v6 }
 0x38a   : > { %3068 = vmatmul.mubr.msk.bf16.vlgmr.msra.gmra.mrb[8].mxu0 %vm1157_vm1, %v1105_v30 }
 0x38b   : > { %3078 = vmatpush3.bf16.msra.mxu0 %v1151_v12  ;;  %3079 = vmatprep.mubr.msk.bf16.mxu0 %vm3556_vm0, %v3554_v6 }
 0x38c   : > { %3089 = vmatprep.subr.bf16.mxu0 %v3554_v6 }
 0x38e   : > { %3074 = vmatmul.mubr.msk.bf16.vlgmr.msra.gmra.mrb[8].mxu1 %vm1157_vm1, %v1106_v31 }
 0x38f   : > { %3085 = vmatprep.mubr.msk.bf16.mxu1 %vm3556_vm0, %v3554_v6 }
 0x3e3   : > { %v1198_v33 = vpop.f32.mrb[4].mxu0 }
 0x3e4   : > { %v1199_v9 = vadd.f32 %v1198_v33, %v1155_v32  ;;  %v3057_v12 = vpop.f32.mrb[5].mxu0 }
 0x3e5   : > { %v1201_v34 = vpop.f32.mrb[6].mxu0 }
 0x3e6   : > { %v1202_v35 = vadd.f32 %v1201_v34, %v1156_v8  ;;  %v3058_v36 = vpop.f32.mrb[7].mxu0  ;;  %v1347_v38 = vsel %vm1346_vm2, %v1199_v9, -inf }
 0x3e7   : > { %1348 = vmax.xlane.f32.xlu0 %v1347_v38 }
 0x3e8   : > { %v1350_v39 = vsel %vm1346_vm2, %v1202_v35, -inf }
 0x3e9   : > { %1351 = vmax.xlane.f32.xlu1 %v1350_v39 }
 0x459   : > { %v1245_v40 = vpop.f32.mrb[4].mxu1 }
 0x45a   : > { %v1246_v41 = vadd.f32 %v1245_v40, %v1155_v32  ;;  %v3063_v42 = vpop.f32.mrb[5].mxu1 }
 0x45b   : > { %v1248_v43 = vpop.f32.mrb[6].mxu1 }
 0x45c   : > { %v1249_v44 = vadd.f32 %v1248_v43, %v1156_v8  ;;  %v3064_v45 = vpop.f32.mrb[7].mxu1  ;;  %v1353_v46 = vsel %vm1346_vm2, %v1246_v41, -inf }
 0x45d   : > { %1354 = vmax.xlane.f32.xlu0 %v1353_v46  ;;  %v1292_v47 = vpop.f32.mrb[8].mxu0 }
 0x45e   : > { %v3069_v48 = vpop.f32.mrb[9].mxu0  ;;  %v1293_v50 = vadd.f32 %v1292_v47, %v1155_v32  ;;  %v1356_v53 = vsel %vm1346_vm2, %v1249_v44, -inf }
 0x45f   : > { %v1295_v49 = vpop.f32.mrb[10].mxu0 }
 0x460   : > { %v1296_v51 = vadd.f32 %v1295_v49, %v1156_v8  ;;  %v3070_v52 = vpop.f32.mrb[11].mxu0  ;;  %v1359_v2 = vsel %vm1346_vm2, %v1293_v50, -inf }
 0x461   : > { %v1339_v55 = vpop.f32.mrb[8].mxu1  ;;  %1357 = vmax.xlane.f32.xlu0 %v1356_v53 }
 0x462   : > { %v3075_v58 = vpop.f32.mrb[9].mxu1  ;;  %v1362_v61 = vsel %vm1346_vm2, %v1296_v51, -inf  ;;  %v1340_v63 = vadd.f32 %v1339_v55, %v1155_v32 }
 0x463   : > { %v1342_v62 = vpop.f32.mrb[10].mxu1  ;;  %1363 = vmax.xlane.f32.xlu1 %v1362_v61 }
 0x464   : > { %v4003_v0 = vadd.f32 %v1342_v62, %v1156_v8  ;;  %v3076_v1 = vpop.f32.mrb[11].mxu1  ;;  %v1365_v4 = vsel %vm1346_vm2, %v1340_v63, -inf }
 0x465   : > { %1360 = vmax.xlane.f32.xlu0 %v1359_v2 }
 0x466   : > { %v1368_v3 = vsel %vm1346_vm2, %v4003_v0, -inf }
 0x467   : > { %1369 = vmax.xlane.f32.xlu1 %v1368_v3 }
 0x469   : > { %1366 = vmax.xlane.f32.xlu0 %v1365_v4 }
 0x474   : > { %v1349_v5 = vpop.xlane.xlu0 %1348 }
 0x475   : > { %v1371_v7 = vsub.f32 %v1199_v9, %v1349_v5 }
 0x476   : > { %v1352_v10 = vpop.xlane.xlu1 %1351 }
 0x477   : > { %v1379_v11 = vmul.f32 1.442695, %v1371_v7  ;;  %v1372_v14 = vsub.f32 %v1202_v35, %v1352_v10 }
 0x479   : > { %3366 = vpow2.f32 %v1379_v11  ;;  %v1381_v15 = vmul.f32 1.442695, %v1372_v14 }
 0x47b   : > { %3368 = vpow2.f32 %v1381_v15 }
 0x483   : > { %v3367_v16 = vpop.eup %3366 }
 0x484   : > { %v1395_v17 = vsel %vm1346_vm2, %v3367_v16, 0.0 }
 0x485   : > { %v3369_v18 = vpop.eup %3368  ;;  %1396 = vadd.xlane.f32.xlu0 %v1395_v17 }
 0x486   : > { %v1398_v19 = vsel %vm1346_vm2, %v3369_v18, 0.0 }
 0x487   : > { %1399 = vadd.xlane.f32.xlu1 %v1398_v19 }
 0x4ea   : > { %v1355_v20 = vpop.xlane.xlu0 %1354 }
 0x4eb   : > { %v1373_v21 = vsub.f32 %v1246_v41, %v1355_v20 }
 0x4ed   : > { %v1383_v22 = vmul.f32 1.442695, %v1373_v21 }
 0x4ee   : > { %v1358_v23 = vpop.xlane.xlu0 %1357 }
 0x4ef   : > { %3370 = vpow2.f32 %v1383_v22  ;;  %v1374_v24 = vsub.f32 %v1249_v44, %v1358_v23  ;;  %v3274_v22 = vld [vmem:[%s3790_s23] sm:$0xff]  }
 0x4f0   : > { %v1364_v25 = vpop.xlane.xlu1 %1363 }
 0x4f1   : > { %v1385_v26 = vmul.f32 1.442695, %v1374_v24  ;;  %v1376_v27 = vsub.f32 %v1296_v51, %v1364_v25  ;;  %v3275_v24 = vld [vmem:[%s3790_s23 + $0x8] sm:$0xff]  }
 0x4f2   : > { %v1361_v28 = vpop.xlane.xlu0 %1360 }
 0x4f3   : > { %3372 = vpow2.f32 %v1385_v26  ;;  %v1389_v29 = vmul.f32 1.442695, %v1376_v27  ;;  %v1375_v30 = vsub.f32 %v1293_v50, %v1361_v28 }
 0x4f4   : > { %v1370_v43 = vpop.xlane.xlu1 %1369 }
 0x4f5   : > { %3374 = vpow2.f32 %v1389_v29  ;;  %v1387_v31 = vmul.f32 1.442695, %v1375_v30  ;;  %v1378_v50 = vsub.f32 %v4003_v0, %v1370_v43 }
 0x4f6   : > { %v1367_v32 = vpop.xlane.xlu0 %1366 }
 0x4f7   : > { %3376 = vpow2.f32 %v1387_v31  ;;  %v1377_v33 = vsub.f32 %v1340_v63, %v1367_v32  ;;  %v1393_v52 = vmul.f32 1.442695, %v1378_v50 }
 0x4f9   : > { %v3371_v8 = vpop.eup %3370  ;;  %v1391_v9 = vmul.f32 1.442695, %v1377_v33 }
 0x4fa   : > { %v1401_v12 = vsel %vm1346_vm2, %v3371_v8, 0.0 }
 0x4fb   : > { %3378 = vpow2.f32 %v1391_v9  ;;  %1402 = vadd.xlane.f32.xlu0 %v1401_v12  ;;  %v3279_v12 = vld [vmem:[%s3790_s23 + $0x18] sm:$0xff]  }
 0x4fd   : > { %v3373_v34 = vpop.eup %3372 }
 0x4fe   : > { %v1404_v35 = vsel %vm1346_vm2, %v3373_v34, 0.0 }
 0x4ff   : > { %v3375_v36 = vpop.eup %3374  ;;  %1405 = vadd.xlane.f32.xlu1 %v1404_v35 }
 0x500   : > { %v1410_v40 = vsel %vm1346_vm2, %v3375_v36, 0.0 }
 0x501   : > { %v3377_v38 = vpop.eup %3376 }
 0x502   : > { %v1407_v39 = vsel %vm1346_vm2, %v3377_v38, 0.0 }
 0x503   : > { %1408 = vadd.xlane.f32.xlu0 %v1407_v39  ;;  %1411 = vadd.xlane.f32.xlu1 %v1410_v40 }
 0x505   : > { %v4015_v41 = vpop.eup %3378 }
 0x506   : > { %v1413_v42 = vsel %vm1346_vm2, %v4015_v41, 0.0 }
 0x507   : > { %1414 = vadd.xlane.f32.xlu0 %v1413_v42  ;;  %v3282_v42 = vld [vmem:[%s3829_s22 + $0x4] ss:$16 sps:$4 sm:$0xff]  }
 0x512   : > { %v1397_v44 = vpop.xlane.xlu0 %1396 }
 0x513   : > { %3380 = vrcp.f32 %v1397_v44 }
 0x514   : > { %v1400_v45 = vpop.xlane.xlu1 %1399  ;;  %3233 = vrot.lane.b32.xlu1 %v3939_v13, %s3559_s15 }
 0x515   : > { %3382 = vrcp.f32 %v1400_v45 }
 0x516   : > { %3384 = vpow2.f32 %v1393_v52  ;;  %v3280_v52 = vld [vmem:[%s3829_s22] ss:$16 sps:$4 sm:$0xff]  }
 0x51d   : > { %v3381_v46 = vpop.eup %3380  ;;  %3228 = vrot.lane.b32.xlu0 %v3939_v13, %s3560_s20  ;;  %s4267_s20 = sld [smem:[#allocation19_spill]] (!%p2942_p3) }
 0x51e   : > { %v1427_v48 = vmul.f32 %v3381_v46, %v3367_v16 }
 0x51f   : > { %v3383_v47 = vpop.eup %3382 }
 0x520   : > { %v1428_v49 = vmul.f32 %v3383_v47, %v3369_v18  ;;  %v3385_v53 = vpop.eup %3384 }
 0x521   : > { %v1416_v55 = vsel %vm1346_vm2, %v3385_v53, 0.0 }
 0x522   : > { %v1435_v51 = vpack.c.bf16 %v1428_v49, %v1427_v48  ;;  %v3304_v48 = vld [vmem:[%s3790_s23 + $0x30] sm:$0xff]  }
 0x524   : > { %3080 = vmatmul.mubr.msk.bf16.vlgmr.msra.gmra.mrb[12].mxu0 %vm1346_vm2, %v1435_v51 }
 0x525   : > { %3091 = vmatprep.mubr.msk.bf16.mxu0 %vm3556_vm0, %v3554_v6 }
 0x538   : > { %1417 = vadd.xlane.f32.xlu1 %v1416_v55 }
 0x549   : > { %3238 = vrot.lane.b32.xlu1 %v3939_v13, %s3561_s25 }
 0x588   : > { %v1403_v58 = vpop.xlane.xlu0 %1402 }
 0x58c   : > { %v1406_v61 = vpop.xlane.xlu1 %1405 }
 0x58d   : > { %3386 = vrcp.f32 %v1406_v61  ;;  %v3305_v61 = vld [vmem:[%s3790_s23 + $0x38] sm:$0xff]  }
 0x58e   : > { %3388 = vrcp.f32 %v1403_v58  ;;  %v3285_v58 = vld [vmem:[%s3829_s22 + $0x24] ss:$16 sps:$4 sm:$0xff]  }
 0x590   : > { %v1409_v62 = vpop.xlane.xlu0 %1408  ;;  %v1412_v63 = vpop.xlane.xlu1 %1411 }
 0x591   : > { %3390 = vrcp.f32 %v1409_v62  ;;  %v3283_v62 = vld [vmem:[%s3829_s22 + $0x20] ss:$16 sps:$4 sm:$0xff]  }
 0x592   : > { %3392 = vrcp.f32 %v1412_v63  ;;  %v3308_v63 = vld [vmem:[%s3829_s22 + $0xc] ss:$16 sps:$4 sm:$0xff]  }
 0x594   : > { %v1415_v0 = vpop.xlane.xlu0 %1414  ;;  %v3234_v1 = vpop.permute.xlu1 %3233 }
 0x595   : > { %v3236_v2 = vunpack.i.h.bf16 %v3234_v1  ;;  %v3235_v3 = vunpack.i.l.bf16 %v3234_v1  ;;  %3394 = vrcp.f32 %v1415_v0  ;;  %v3288_v0 = vld [vmem:[%s3829_s22 + $0x44] ss:$16 sps:$4 sm:$0xff]   ;;  %v3286_v1 = vld [vmem:[%s3829_s22 + $0x40] ss:$16 sps:$4 sm:$0xff]  }
 0x597   : > { %v3387_v4 = vpop.eup %3386  ;;  %v1153_v5 = vpack.c.bf16 %v3236_v2, %v3235_v3  ;;  %v3291_v2 = vld [vmem:[%s3829_s22 + $0x64] ss:$16 sps:$4 sm:$0xff]   ;;  %v3289_v3 = vld [vmem:[%s3829_s22 + $0x60] ss:$16 sps:$4 sm:$0xff]  }
 0x598   : > { %v3229_v7 = vpop.permute.xlu0 %3228  ;;  %v3389_v10 = vpop.eup %3388  ;;  %v1430_v13 = vmul.f32 %v3387_v4, %v3373_v34  ;;  %v3294_v4 = vld [vmem:[%s3829_s22 + $0x84] ss:$16 sps:$4 sm:$0xff]  }
 0x599   : > { %v3231_v11 = vunpack.i.h.bf16 %v3229_v7  ;;  %v3230_v14 = vunpack.i.l.bf16 %v3229_v7  ;;  %3090 = vmatpush3.bf16.msra.mxu0 %v1153_v5  ;;  %v1429_v18 = vmul.f32 %v3389_v10, %v3371_v8  ;;  %v3277_v8 = vld [vmem:[%s3790_s23 + $0x10] sm:$0xff]  }
 0x59a   : > { %3101 = vmatprep.subr.bf16.mxu0 %v3554_v6  ;;  %v3292_v5 = vld [vmem:[%s3829_s22 + $0x80] ss:$16 sps:$4 sm:$0xff]   ;;  %v3297_v7 = vld [vmem:[%s3829_s22 + $0xa4] ss:$16 sps:$4 sm:$0xff]  }
 0x59b   : > { %v3391_v15 = vpop.eup %3390  ;;  %v1152_v16 = vpack.c.bf16 %v3231_v11, %v3230_v14  ;;  %v1436_v21 = vpack.c.bf16 %v1430_v13, %v1429_v18  ;;  %v3300_v10 = vld [vmem:[%s3829_s22 + $0xc4] ss:$16 sps:$4 sm:$0xff]   ;;  %v3298_v11 = vld [vmem:[%s3829_s22 + $0xc0] ss:$16 sps:$4 sm:$0xff]   ;;  %v3306_v18 = vld [vmem:[%s3829_s22 + $0x8] ss:$16 sps:$4 sm:$0xff]  }
 0x59c   : > { %v3393_v17 = vpop.eup %3392  ;;  %v1431_v19 = vmul.f32 %v3391_v15, %v3377_v38  ;;  %v3276_v38 = vld [vmem:[%s3790_s23 + $0x20] sm:$0xff]  }
 0x59d   : > { %v1432_v20 = vmul.f32 %v3393_v17, %v3375_v36  ;;  %3084 = vmatpush3.bf16.msra.mxu1 %v1152_v16  ;;  %v3303_v14 = vld [vmem:[%s3829_s22 + $0xe4] ss:$16 sps:$4 sm:$0xff]   ;;  %v3301_v13 = vld [vmem:[%s3829_s22 + $0xe0] ss:$16 sps:$4 sm:$0xff]  }
 0x59e   : > { %3095 = vmatprep.subr.bf16.mxu1 %v3554_v6 }
 0x59f   : > { %v1437_v23 = vpack.c.bf16 %v1432_v20, %v1431_v19  ;;  %v3395_v30 = vpop.eup %3394 }
 0x5a0   : > { %3086 = vmatmul.mubr.msk.bf16.vlgmr.msra.gmra.mrb[12].mxu1 %vm1346_vm2, %v1436_v21  ;;  %v1433_v32 = vmul.f32 %v3395_v30, %v4015_v41  ;;  %v3278_v41 = vld [vmem:[%s3790_s23 + $0x28] sm:$0xff]  }
 0x5a1   : > { %3092 = vmatmul.mubr.msk.bf16.vlgmr.msra.gmra.mrb[16].mxu0 %vm1346_vm2, %v1437_v23  ;;  %3097 = vmatprep.mubr.msk.bf16.mxu1 %vm3556_vm0, %v3554_v6  ;;  %v3311_v21 = vld [vmem:[%s3829_s22 + $0x2c] ss:$16 sps:$4 sm:$0xff]  }
 0x5a2   : > { %3102 = vmatpush3.bf16.msra.mxu0 %v3274_v22  ;;  %3105 = vmatprep.mubr.msk.bf16.mxu0 %vm3556_vm0, %v3554_v6  ;;  %v3309_v22 = vld [vmem:[%s3829_s22 + $0x28] ss:$16 sps:$4 sm:$0xff]   ;;  %v3314_v23 = vld [vmem:[%s3829_s22 + $0x4c] ss:$16 sps:$4 sm:$0xff]  }
 0x5a3   : > { %3103 = vmatprep.subr.bf16.mxu0 %v3554_v6  ;;  %v3326_v30 = vld [vmem:[%s3829_s22 + $0xcc] ss:$16 sps:$4 sm:$0xff]  }
 0x5a6   : > { %3104 = vmatpush3.bf16.msra.mxu0 %v3275_v24  ;;  %v3312_v24 = vld [vmem:[%s3829_s22 + $0x48] ss:$16 sps:$4 sm:$0xff]  }
 0x5a7   : > { %3117 = vmatprep.subr.bf16.mxu0 %v3554_v6 }
 0x5c5   : > { %v1418_v25 = vpop.xlane.xlu1 %1417 }
 0x5c6   : > { %3396 = vrcp.f32 %v1418_v25  ;;  %v3317_v25 = vld [vmem:[%s3829_s22 + $0x6c] ss:$16 sps:$4 sm:$0xff]  }
 0x5c9   : > { %v3239_v26 = vpop.permute.xlu1 %3238 }
 0x5ca   : > { %v3241_v27 = vunpack.i.h.bf16 %v3239_v26  ;;  %v3240_v28 = vunpack.i.l.bf16 %v3239_v26  ;;  %v3315_v26 = vld [vmem:[%s3829_s22 + $0x68] ss:$16 sps:$4 sm:$0xff]  }
 0x5cc   : > { %v1154_v29 = vpack.c.bf16 %v3241_v27, %v3240_v28  ;;  %v3320_v27 = vld [vmem:[%s3829_s22 + $0x8c] ss:$16 sps:$4 sm:$0xff]   ;;  %v3318_v28 = vld [vmem:[%s3829_s22 + $0x88] ss:$16 sps:$4 sm:$0xff]  }
 0x5ce   : > { %3096 = vmatpush3.bf16.msra.mxu1 %v1154_v29  ;;  %v3323_v29 = vld [vmem:[%s3829_s22 + $0xac] ss:$16 sps:$4 sm:$0xff]  }
 0x5cf   : > { %3109 = vmatprep.subr.bf16.mxu1 %v3554_v6 }
 0x5d0   : > { %v3397_v31 = vpop.eup %3396 }
 0x5d1   : > { %v1434_v33 = vmul.f32 %v3397_v31, %v3385_v53  ;;  %v3324_v31 = vld [vmem:[%s3829_s22 + $0xc8] ss:$16 sps:$4 sm:$0xff]  }
 0x5d3   : > { %v1438_v9 = vpack.c.bf16 %v1434_v33, %v1433_v32  ;;  %v3329_v32 = vld [vmem:[%s3829_s22 + $0xec] ss:$16 sps:$4 sm:$0xff]   ;;  %v3327_v33 = vld [vmem:[%s3829_s22 + $0xe8] ss:$16 sps:$4 sm:$0xff]  }
 0x5d5   : > { %3098 = vmatmul.mubr.msk.bf16.vlgmr.msra.gmra.mrb[16].mxu1 %vm1346_vm2, %v1438_v9 }
 0x5d6   : > { %3110 = vmatpush3.bf16.msra.mxu1 %v3277_v8  ;;  %3113 = vmatprep.mubr.msk.bf16.mxu1 %vm3556_vm0, %v3554_v6 }
 0x5d7   : > { %3111 = vmatprep.subr.bf16.mxu1 %v3554_v6 }
 0x5da   : > { %3112 = vmatpush3.bf16.msra.mxu1 %v3279_v12 }
 0x5db   : > { %3125 = vmatprep.subr.bf16.mxu1 %v3554_v6 }
 0x5f7   : > { %v1476_v34 = vpop.f32.mrb[12].mxu0 }
 0x5f8   : > { %v3081_v35 = vpop.f32.mrb[13].mxu0 }
 0x5f9   : > { %v1479_v36 = vpop.f32.mrb[14].mxu0  ;;  %v3330_v35 = vld [vmem:[%s3796_s6 + $0x40] sm:$0xff]  }
 0x5fa   : > { %v1615_v39 = vpack.c.bf16 %v1479_v36, %v1476_v34  ;;  %v3082_v40 = vpop.f32.mrb[15].mxu0  ;;  %v3331_v36 = vld [vmem:[%s3796_s6] sm:$0xff]  }
 0x5fb   : > { %v3335_v40 = vld [vmem:[%s3796_s6 + $0x10] sm:$0xff]  }
 0x5fc   : > { %3106 = vmatmul.mubr.msk.bf16.vlgmr.msra.gmra.mrb[20].mxu0 %vm1157_vm1, %v1615_v39  ;;  %v3333_v39 = vld [vmem:[%s3796_s6 + $0x8] sm:$0xff]  }
 0x5fd   : > { %3118 = vmatpush3.bf16.msra.mxu0 %v3276_v38  ;;  %3121 = vmatprep.mubr.msk.bf16.mxu0 %vm3556_vm0, %v3554_v6  ;;  %v3332_v38 = vld [vmem:[%s3796_s6 + $0x48] sm:$0xff]  }
 0x5fe   : > { %3119 = vmatprep.subr.bf16.mxu0 %v3554_v6 }
 0x601   : > { %3120 = vmatpush3.bf16.msra.mxu0 %v3278_v41  ;;  %v3336_v41 = vld [vmem:[%s3796_s6 + $0x58] sm:$0xff]  }
 0x602   : > { %2088 = vmatprep.subr.bf16.mxu0 %v3282_v42  ;;  %v3337_v42 = vld [vmem:[%s3796_s6 + $0x18] sm:$0xff]  }
 0x673   : > { %v1520_v43 = vpop.f32.mrb[12].mxu1 }
 0x674   : > { %v1564_v44 = vpop.f32.mrb[16].mxu0  ;;  %v3087_v45 = vpop.f32.mrb[13].mxu1 }
 0x675   : > { %v3093_v46 = vpop.f32.mrb[17].mxu0  ;;  %v1523_v47 = vpop.f32.mrb[14].mxu1  ;;  %v3340_v45 = vld [vmem:[%s3796_s6 + $0x68] sm:$0xff]  }
 0x676   : > { %v1616_v49 = vpack.c.bf16 %v1523_v47, %v1520_v43  ;;  %v1567_v50 = vpop.f32.mrb[18].mxu0  ;;  %v3088_v51 = vpop.f32.mrb[15].mxu1  ;;  %v3338_v43 = vld [vmem:[%s3796_s6 + $0x60] sm:$0xff]   ;;  %v3341_v46 = vld [vmem:[%s3796_s6 + $0x28] sm:$0xff]   ;;  %v3342_v47 = vld [vmem:[%s3796_s6 + $0x70] sm:$0xff]  }
 0x677   : > { %v1617_v53 = vpack.c.bf16 %v1567_v50, %v1564_v44  ;;  %v3094_v55 = vpop.f32.mrb[19].mxu0  ;;  %v3339_v44 = vld [vmem:[%s3796_s6 + $0x20] sm:$0xff]   ;;  %v3345_v50 = vld [vmem:[%s3796_s6 + $0x38] sm:$0xff]  }
 0x678   : > { %3114 = vmatmul.mubr.msk.bf16.vlgmr.msra.gmra.mrb[20].mxu1 %vm1157_vm1, %v1616_v49  ;;  %v3344_v49 = vld [vmem:[%s3796_s6 + $0x78] sm:$0xff]   ;;  %v3346_v51 = vld [vmem:[%s3796_s6 + $0xc0] sm:$0xff]   ;;  %v3349_v55 = vld [vmem:[%s3796_s6 + $0x88] sm:$0xff]  }
 0x679   : > { %3122 = vmatmul.mubr.msk.bf16.vlgmr.msra.gmra.mrb[24].mxu0 %vm1157_vm1, %v1617_v53  ;;  %3126 = vmatpush3.bf16.msra.mxu1 %v3304_v48  ;;  %v3343_v48 = vld [vmem:[%s3796_s6 + $0x30] sm:$0xff]   ;;  %v3348_v53 = vld [vmem:[%s3796_s6 + $0xc8] sm:$0xff]  }
 0x67a   : > { %2089 = vmatpush1.bf16.msra.mxu0 %v3280_v52  ;;  %2120 = vmatprep.mubr.bf16.mxu0 %v3555_v37  ;;  %v3347_v52 = vld [vmem:[%s3796_s6 + $0x80] sm:$0xff]  }
 0x67b   : > { %2090 = vmatprep.subr.bf16.mxu0 %v3285_v58  ;;  %3127 = vmatprep.subr.bf16.mxu1 %v3554_v6  ;;  %v3350_v58 = vld [vmem:[%s3796_s6 + $0xd0] sm:$0xff]  }
 0x67c   : > { %3129 = vmatprep.mubr.msk.bf16.mxu1 %vm3556_vm0, %v3554_v6  ;;  %v3295_v6 = vld [vmem:[%s3829_s22 + $0xa0] ss:$16 sps:$4 sm:$0xff]  }
 0x67d   : > { %3128 = vmatpush3.bf16.msra.mxu1 %v3305_v61  ;;  %v3351_v61 = vld [vmem:[%s3796_s6 + $0x90] sm:$0xff]  }
 0x67e   : > { %2091 = vmatpush1.bf16.msra.mxu0 %v3283_v62  ;;  %2131 = vmatprep.subr.bf16.mxu1 %v3308_v63  ;;  %v3352_v62 = vld [vmem:[%s3796_s6 + $0xd8] sm:$0xff]  }
 0x67f   : > { %2092 = vmatprep.subr.bf16.mxu0 %v3288_v0  ;;  %v3353_v63 = vld [vmem:[%s3796_s6 + $0x98] sm:$0xff]   ;;  %v3354_v0 = vld [vmem:[%s3796_s6 + $0xe0] sm:$0xff]  }
 0x682   : > { %2093 = vmatpush1.bf16.msra.mxu0 %v3286_v1  ;;  %v3355_v1 = vld [vmem:[%s3796_s6 + $0xa0] sm:$0xff]  }
 0x683   : > { %2094 = vmatprep.subr.bf16.mxu0 %v3291_v2  ;;  %v3356_v2 = vld [vmem:[%s3796_s6 + $0xe8] sm:$0xff]  }
 0x686   : > { %2095 = vmatpush1.bf16.msra.mxu0 %v3289_v3  ;;  %v3357_v3 = vld [vmem:[%s3796_s6 + $0xa8] sm:$0xff]  }
 0x687   : > { %2096 = vmatprep.subr.bf16.mxu0 %v3294_v4  ;;  %v3358_v4 = vld [vmem:[%s3796_s6 + $0xf0] sm:$0xff]  }
 0x68a   : > { %2097 = vmatpush1.bf16.msra.mxu0 %v3292_v5  ;;  %v3359_v5 = vld [vmem:[%s3796_s6 + $0xb0] sm:$0xff]  }
 0x68b   : > { %2098 = vmatprep.subr.bf16.mxu0 %v3297_v7  ;;  %v3360_v7 = vld [vmem:[%s3796_s6 + $0xf8] sm:$0xff]  }
 0x68e   : > { %2099 = vmatpush1.bf16.msra.mxu0 %v3295_v6  ;;  %v3361_v6 = vld [vmem:[%s3796_s6 + $0xb8] sm:$0xff]  }
 0x68f   : > { %2100 = vmatprep.subr.bf16.mxu0 %v3300_v10 }
 0x692   : > { %2101 = vmatpush1.bf16.msra.mxu0 %v3298_v11 }
 0x693   : > { %2102 = vmatprep.subr.bf16.mxu0 %v3303_v14 }
 0x696   : > { %2103 = vmatpush1.bf16.msra.mxu0 %v3301_v13 }
 0x697   : > { %2989 = vmatprep.subr.bf16.mxu0 %v3330_v35 }
 0x699   : > { %2121 = vmatmul.mubr.bf16.vlgmr.msra.gmra.mrb[28].mxu0 %v3910_v54 }
 0x69a   : > { %2990 = vmatpush3.bf16.msra.mxu0 %v3331_v36 }
 0x69b   : > { %2991 = vmatprep.subr.bf16.mxu0 %v3332_v38 }
 0x69e   : > { %2992 = vmatpush3.bf16.msra.mxu0 %v3333_v39 }
 0x6a8   : > { %v1608_v15 = vpop.f32.mrb[16].mxu1 }
 0x6a9   : > { %v3099_v16 = vpop.f32.mrb[17].mxu1 }
 0x6aa   : > { %v1611_v17 = vpop.f32.mrb[18].mxu1 }
 0x6ab   : > { %v1618_v19 = vpack.c.bf16 %v1611_v17, %v1608_v15  ;;  %v3100_v20 = vpop.f32.mrb[19].mxu1 }
 0x6ad   : > { %3130 = vmatmul.mubr.msk.bf16.vlgmr.msra.gmra.mrb[24].mxu1 %vm1157_vm1, %v1618_v19 }
 0x6ae   : > { %2132 = vmatpush1.bf16.msra.mxu1 %v3306_v18  ;;  %2163 = vmatprep.mubr.bf16.mxu1 %v3555_v37  ;;  %v3321_v37 = vld [vmem:[%s3829_s22 + $0xa8] ss:$16 sps:$4 sm:$0xff]  }
 0x6af   : > { %2133 = vmatprep.subr.bf16.mxu1 %v3311_v21 }
 0x6b2   : > { %2134 = vmatpush1.bf16.msra.mxu1 %v3309_v22 }
 0x6b3   : > { %2135 = vmatprep.subr.bf16.mxu1 %v3314_v23  ;;  %v4140_v23 = vld [vmem:[%s3840_s30] sm:$0xf] }
 0x6b6   : > { %2136 = vmatpush1.bf16.msra.mxu1 %v3312_v24  ;;  %v1911_v24 = vrot.slane %v4140_v23, %v814_v60 }
 0x6b7   : > { %2137 = vmatprep.subr.bf16.mxu1 %v3317_v25  ;;  %v1915_v25 = vrot.slane %v4140_v23, %v818_v57 }
 0x6ba   : > { %2138 = vmatpush1.bf16.msra.mxu1 %v3315_v26 }
 0x6bb   : > { %2139 = vmatprep.subr.bf16.mxu1 %v3320_v27 }
 0x6be   : > { %2140 = vmatpush1.bf16.msra.mxu1 %v3318_v28 }
 0x6bf   : > { %2141 = vmatprep.subr.bf16.mxu1 %v3323_v29 }
 0x6c2   : > { %2142 = vmatpush1.bf16.msra.mxu1 %v3321_v37 }
 0x6c3   : > { %2143 = vmatprep.subr.bf16.mxu1 %v3326_v30 }
 0x6c6   : > { %2144 = vmatpush1.bf16.msra.mxu1 %v3324_v31 }
 0x6c7   : > { %2145 = vmatprep.subr.bf16.mxu1 %v3329_v32 }
 0x6ca   : > { %2146 = vmatpush1.bf16.msra.mxu1 %v3327_v33 }
 0x6cb   : > { %3011 = vmatprep.subr.bf16.mxu1 %v3346_v51 }
 0x6cd   : > { %2164 = vmatmul.mubr.bf16.vlgmr.msra.gmra.mrb[28].mxu1 %v3910_v54  ;;  %v3334_v54 = vld [vmem:[%s3796_s6 + $0x50] sm:$0xff]  }
 0x6ce   : > { %2993 = vmatprep.subr.bf16.mxu0 %v3334_v54  ;;  %3012 = vmatpush3.bf16.msra.mxu1 %v3347_v52 }
 0x6cf   : > { %v4101_v8 = vpop.f32.mrb[20].mxu0  ;;  %2994 = vmatpush3.bf16.msra.mxu0 %v3335_v40  ;;  %3013 = vmatprep.subr.bf16.mxu1 %v3348_v53 }
 0x6d0   : > { %v3107_v9 = vpop.f32.mrb[21].mxu0  ;;  %2995 = vmatprep.subr.bf16.mxu0 %v3336_v41 }
 0x6d1   : > { %v4103_v12 = vpop.f32.mrb[22].mxu0 }
 0x6d2   : > { %v3108_v34 = vpop.f32.mrb[23].mxu0  ;;  %3014 = vmatpush3.bf16.msra.mxu1 %v3349_v55 }
 0x6d3   : > { %2996 = vmatpush3.bf16.msra.mxu0 %v3337_v42  ;;  %3015 = vmatprep.subr.bf16.mxu1 %v3350_v58 }
 0x6d4   : > { %2997 = vmatprep.subr.bf16.mxu0 %v3338_v43 }
 0x6d6   : > { %3016 = vmatpush3.bf16.msra.mxu1 %v3351_v61 }
 0x6d7   : > { %2998 = vmatpush3.bf16.msra.mxu0 %v3339_v44  ;;  %3017 = vmatprep.subr.bf16.mxu1 %v3352_v62 }
 0x6d8   : > { %2999 = vmatprep.subr.bf16.mxu0 %v3340_v45 }
 0x6da   : > { %3018 = vmatpush3.bf16.msra.mxu1 %v3353_v63 }
 0x6db   : > { %3000 = vmatpush3.bf16.msra.mxu0 %v3341_v46  ;;  %3019 = vmatprep.subr.bf16.mxu1 %v3354_v0 }
 0x6dc   : > { %3001 = vmatprep.subr.bf16.mxu0 %v3342_v47 }
 0x6de   : > { %3020 = vmatpush3.bf16.msra.mxu1 %v3355_v1 }
 0x6df   : > { %3002 = vmatpush3.bf16.msra.mxu0 %v3343_v48  ;;  %3021 = vmatprep.subr.bf16.mxu1 %v3356_v2 }
 0x6e0   : > { %3003 = vmatprep.subr.bf16.mxu0 %v3344_v49 }
 0x6e2   : > { %3022 = vmatpush3.bf16.msra.mxu1 %v3357_v3 }
 0x6e3   : > { %3004 = vmatpush3.bf16.msra.mxu0 %v3345_v50  ;;  %3023 = vmatprep.subr.bf16.mxu1 %v3358_v4 }
 0x6e6   : > { %3024 = vmatpush3.bf16.msra.mxu1 %v3359_v5 }
 0x6e7   : > { %3025 = vmatprep.subr.bf16.mxu1 %v3360_v7 }
 0x6ea   : > { %3026 = vmatpush3.bf16.msra.mxu1 %v3361_v6 }
 0x74b   : > { %v1740_v10 = vpop.f32.mrb[20].mxu1 }
 0x74c   : > { %v1859_v11 = vadd.f32 %v1740_v10, %v4101_v8  ;;  %v1796_v14 = vpop.f32.mrb[24].mxu0  ;;  %v3115_v13 = vpop.f32.mrb[21].mxu1 }
 0x74d   : > { %v3123_v15 = vpop.f32.mrb[25].mxu0  ;;  %v1743_v16 = vpop.f32.mrb[22].mxu1 }
 0x74e   : > { %v1860_v17 = vadd.f32 %v1859_v11, %v1796_v14  ;;  %v1862_v18 = vadd.f32 %v1743_v16, %v4103_v12  ;;  %v1799_v19 = vpop.f32.mrb[26].mxu0  ;;  %v3116_v20 = vpop.f32.mrb[23].mxu1  ;;  %v1922_v16 = vsub.s32 3, %v3918_v56 }
 0x74f   : > { %v3124_v21 = vpop.f32.mrb[27].mxu0 }
 0x750   : > { %v1863_v22 = vadd.f32 %v1862_v18, %v1799_v19  ;;  %v1923_v18 = vrot.slane %v4140_v23, %v1922_v16 }
 0x76c   : > { %v2122_v26 = vpop.f32.mrb[28].mxu0 }
 0x76d   : > { %v2123_v27 = vadd.f32 %v2122_v26, %v1911_v24  ;;  %v2124_v28 = vpop.f32.mrb[29].mxu0 }
 0x76e   : > { %v2125_v29 = vadd.f32 %v2124_v28, %v1915_v25  ;;  %v2126_v37 = vpop.f32.mrb[30].mxu0 }
 0x76f   : > { %v2182_v30 = vmul.f32 %v2123_v27, %v2123_v27  ;;  %v2127_v31 = vadd.f32 %v2126_v37, %v1911_v24  ;;  %v2128_v32 = vpop.f32.mrb[31].mxu0  ;;  %v2174_v1 = vmul.f32 0.5, %v2123_v27 }
 0x770   : > { %v2183_v33 = vmul.f32 %v2125_v29, %v2125_v29  ;;  %v2129_v8 = vadd.f32 %v2128_v32, %v1915_v25  ;;  %v2175_v4 = vmul.f32 0.5, %v2125_v29 }
 0x771   : > { %v2190_v9 = vmul.f32 %v2182_v30, %v2123_v27  ;;  %v2186_v12 = vmul.f32 %v2127_v31, %v2127_v31  ;;  %v2178_v2 = vmul.f32 0.5, %v2127_v31 }
 0x772   : > { %v2191_v34 = vmul.f32 %v2183_v33, %v2125_v29  ;;  %v2187_v35 = vmul.f32 %v2129_v8, %v2129_v8  ;;  %v2179_v5 = vmul.f32 0.5, %v2129_v8 }
 0x773   : > { %v2198_v36 = vmul.f32 0.044715, %v2190_v9  ;;  %v2194_v60 = vmul.f32 %v2186_v12, %v2127_v31 }
 0x774   : > { %v2199_v38 = vmul.f32 0.044715, %v2191_v34  ;;  %v2195_v39 = vmul.f32 %v2187_v35, %v2129_v8 }
 0x775   : > { %v2206_v54 = vadd.f32 %v2198_v36, %v2123_v27  ;;  %v2202_v57 = vmul.f32 0.044715, %v2194_v60 }
 0x776   : > { %v2207_v40 = vadd.f32 %v2199_v38, %v2125_v29  ;;  %v2203_v41 = vmul.f32 0.044715, %v2195_v39 }
 0x777   : > { %v2214_v42 = vmul.f32 0.7978846, %v2206_v54  ;;  %v2210_v43 = vadd.f32 %v2202_v57, %v2127_v31 }
 0x778   : > { %v2215_v44 = vmul.f32 0.7978846, %v2207_v40  ;;  %v2211_v45 = vadd.f32 %v2203_v41, %v2129_v8 }
 0x779   : > { %3398 = vtanh.f32 %v2214_v42  ;;  %v2218_v46 = vmul.f32 0.7978846, %v2210_v43 }
 0x77a   : > { %3400 = vtanh.f32 %v2215_v44  ;;  %v2219_v47 = vmul.f32 0.7978846, %v2211_v45 }
 0x77b   : > { %3402 = vtanh.f32 %v2218_v46 }
 0x77c   : > { %3404 = vtanh.f32 %v2219_v47 }
 0x780   : > { %v1852_v48 = vpop.f32.mrb[24].mxu1 }
 0x781   : > { %v4148_v49 = vadd.f32 %v1860_v17, %v1852_v48  ;;  %v3131_v50 = vpop.f32.mrb[25].mxu1  ;;  %v1919_v17 = vrot.slane %v4140_v23, %v822_v59 }
 0x782   : > { %v1855_v51 = vpop.f32.mrb[26].mxu1 }
 0x783   : > { %v3399_v52 = vpop.eup %3398  ;;  %v4150_v53 = vadd.f32 %v1863_v22, %v1855_v51  ;;  %v3132_v55 = vpop.f32.mrb[27].mxu1 }
 0x784   : > { %v3401_v58 = vpop.eup %3400  ;;  %v2230_v61 = vadd.f32 1.0, %v3399_v52 }
 0x785   : > { %v3403_v62 = vpop.eup %3402  ;;  %v2231_v63 = vadd.f32 1.0, %v3401_v58 }
 0x786   : > { %v3405_v0 = vpop.eup %3404  ;;  %v2234_v3 = vadd.f32 1.0, %v3403_v62  ;;  %v2238_v6 = vmul.f32 %v2230_v61, %v2174_v1 }
 0x787   : > { %v2235_v7 = vadd.f32 1.0, %v3405_v0  ;;  %v2239_v11 = vmul.f32 %v2231_v63, %v2175_v4 }
 0x788   : > { %v2242_v10 = vmul.f32 %v2234_v3, %v2178_v2 }
 0x789   : > { %v2243_v14 = vmul.f32 %v2235_v7, %v2179_v5  ;;  %v2909_v7 = vld [vmem:[%s724_s24] ss:$0 sm:$0xff] }
 0x78a   : > { %v2246_v13 = vpack.c.bf16 %v2242_v10, %v2238_v6  ;;  %v2876_v10 = vld [vmem:[%s4265_s27] ss:$0 sm:$0xff] }
 0x78b   : > { %v2247_v15 = vpack.c.bf16 %v2243_v14, %v2239_v11 }
 0x78d   : > { %2545 = vmatprep.mubr.bf16.mxu0 %v2247_v15 }
 0x78e   : > { %2546 = vmatmul.mubr.bf16.vlgmr.msra.gmra.mrb[32].mxu0 %v2246_v13 }
 0x7a0   : > { %v2165_v19 = vpop.f32.mrb[28].mxu1 }
 0x7a1   : > { %v2166_v20 = vadd.f32 %v2165_v19, %v1919_v17  ;;  %v2167_v21 = vpop.f32.mrb[29].mxu1 }
 0x7a2   : > { %v2168_v22 = vadd.f32 %v2167_v21, %v1923_v18  ;;  %v2169_v24 = vpop.f32.mrb[30].mxu1  ;;  %v1873_v21 = vadd.f32 %v2876_v10, %v4150_v53 }
 0x7a3   : > { %v2184_v25 = vmul.f32 %v2166_v20, %v2166_v20  ;;  %v2170_v26 = vadd.f32 %v2169_v24, %v1919_v17  ;;  %v2171_v27 = vpop.f32.mrb[31].mxu1  ;;  %v2176_v45 = vmul.f32 0.5, %v2166_v20  ;;  %v1872_v17 = vadd.f32 %v2876_v10, %v4148_v49 }
 0x7a4   : > { %v2185_v28 = vmul.f32 %v2168_v22, %v2168_v22  ;;  %v2172_v29 = vadd.f32 %v2171_v27, %v1923_v18  ;;  %v2177_v48 = vmul.f32 0.5, %v2168_v22 }
 0x7a5   : > { %v2192_v37 = vmul.f32 %v2184_v25, %v2166_v20  ;;  %v2188_v30 = vmul.f32 %v2170_v26, %v2170_v26  ;;  %v2180_v46 = vmul.f32 0.5, %v2170_v26  ;;  %v3414_v25 = vld [vmem:[#allocation2] sm:$0xff] }
 0x7a6   : > { %v2193_v31 = vmul.f32 %v2185_v28, %v2168_v22  ;;  %v2189_v32 = vmul.f32 %v2172_v29, %v2172_v29  ;;  %v2181_v50 = vmul.f32 0.5, %v2172_v29  ;;  %v3415_v28 = vld [vmem:[#allocation2 + $0x8] sm:$0xff] }
 0x7a7   : > { %v2200_v33 = vmul.f32 0.044715, %v2192_v37  ;;  %v2196_v56 = vmul.f32 %v2188_v30, %v2170_v26 }
 0x7a8   : > { %v2201_v8 = vmul.f32 0.044715, %v2193_v31  ;;  %v2197_v59 = vmul.f32 %v2189_v32, %v2172_v29 }
 0x7a9   : > { %v2208_v9 = vadd.f32 %v2200_v33, %v2166_v20  ;;  %v2204_v23 = vmul.f32 0.044715, %v2196_v56 }
 0x7aa   : > { %v2209_v12 = vadd.f32 %v2201_v8, %v2168_v22  ;;  %v2205_v34 = vmul.f32 0.044715, %v2197_v59 }
 0x7ab   : > { %v2216_v35 = vmul.f32 0.7978846, %v2208_v9  ;;  %v2212_v36 = vadd.f32 %v2204_v23, %v2170_v26 }
 0x7ac   : > { %v2217_v60 = vmul.f32 0.7978846, %v2209_v12  ;;  %v2213_v38 = vadd.f32 %v2205_v34, %v2172_v29 }
 0x7ad   : > { %3406 = vtanh.f32 %v2216_v35  ;;  %v2220_v39 = vmul.f32 0.7978846, %v2212_v36  ;;  %v2943_v36 = vld [vmem:[%s4266_s26] ss:$0 sm:$0xff] (!%p2942_p3) }
 0x7ae   : > { %3408 = vtanh.f32 %v2217_v60  ;;  %v2221_v54 = vmul.f32 0.7978846, %v2213_v38  ;;  %v2944_v38 = vld [vmem:[%s4267_s20] ss:$0 sm:$0xff] (!%p2942_p3) }
 0x7af   : > { %3410 = vtanh.f32 %v2220_v39 }
 0x7b0   : > { %3412 = vtanh.f32 %v2221_v54 }
 0x7b7   : > { %v3407_v57 = vpop.eup %3406 }
 0x7b8   : > { %v3409_v40 = vpop.eup %3408  ;;  %v2232_v41 = vadd.f32 1.0, %v3407_v57 }
 0x7b9   : > { %v3411_v42 = vpop.eup %3410  ;;  %v2233_v43 = vadd.f32 1.0, %v3409_v40 }
 0x7ba   : > { %v3413_v44 = vpop.eup %3412  ;;  %v2236_v47 = vadd.f32 1.0, %v3411_v42  ;;  %v2240_v52 = vmul.f32 %v2232_v41, %v2176_v45 }
 0x7bb   : > { %v2237_v51 = vadd.f32 1.0, %v3413_v44  ;;  %v2241_v58 = vmul.f32 %v2233_v43, %v2177_v48 }
 0x7bc   : > { %v2244_v55 = vmul.f32 %v2236_v47, %v2180_v46 }
 0x7bd   : > { %v2245_v61 = vmul.f32 %v2237_v51, %v2181_v50 }
 0x7be   : > { %v2248_v62 = vpack.c.bf16 %v2244_v55, %v2240_v52 }
 0x7bf   : > { %v2249_v63 = vpack.c.bf16 %v2245_v61, %v2241_v58 }
 0x7c1   : > { %2586 = vmatprep.mubr.bf16.mxu1 %v2249_v63 }
 0x7c2   : > { %2587 = vmatmul.mubr.bf16.vlgmr.msra.gmra.mrb[32].mxu1 %v2248_v62 }
 0x861   : > { %v3005_v0 = vpop.f32.mrb[32].mxu0 }
 0x862   : > { %v3006_v1 = vpop.f32.mrb[33].mxu0 }
 0x863   : > { %v3007_v2 = vadd.f32 %v3006_v1, %v3005_v0  ;;  %v3008_v3 = vpop.f32.mrb[34].mxu0 }
 0x864   : > { %v3009_v4 = vpop.f32.mrb[35].mxu0 }
 0x865   : > { %v3010_v5 = vadd.f32 %v3009_v4, %v3008_v3  ;;  %v2548_v14 = vadd.f32 %v3007_v2, %v2909_v7 }
 0x867   : > { %v2551_v18 = vadd.f32 %v3010_v5, %v2909_v7 }
 0x895   : > { %v3027_v6 = vpop.f32.mrb[32].mxu1 }
 0x896   : > { %v3028_v11 = vpop.f32.mrb[33].mxu1 }
 0x897   : > { %v3029_v13 = vadd.f32 %v3028_v11, %v3027_v6  ;;  %v3030_v15 = vpop.f32.mrb[34].mxu1 }
 0x898   : > { %v3031_v16 = vpop.f32.mrb[35].mxu1 }
 0x899   : > { %v2589_v19 = vadd.f32 %v3029_v13, %v2548_v14  ;;  %v3032_v20 = vadd.f32 %v3031_v16, %v3030_v15 }
 0x89b   : > { %v2595_v22 = vadd.f32 %v2589_v19, %v1872_v17  ;;  %v2592_v24 = vadd.f32 %v3032_v20, %v2551_v18  ;;  %2604 = sbr.rel (%p2942_p3) target bundleno = 2523 (0x9db), region = 104 }
 0x89d   : > { %v2597_v26 = vadd.f32 %v3414_v25, %v2595_v22  ;;  %v2596_v27 = vadd.f32 %v2592_v24, %v1873_v21 }
 0x89f   : > { %2599 = vst [vmem:[#allocation2] sm:$0xff] %v2597_v26  ;;  %v2598_v29 = vadd.f32 %v3415_v28, %v2596_v27  ;;  %2605 = vadd.xlane.f32.xlu0 (!%p2942_p3), %v2597_v26 }
 0x8a1   : > { %2600 = vst [vmem:[#allocation2 + $0x8] sm:$0xff] %v2598_v29 }
 0x8a3   : > { %2607 = vadd.xlane.f32.xlu0 %v2598_v29 }
 0x92c   : > { %v2606_v49 = vpop.xlane.xlu0 %2605 }
 0x92d   : > { %v2609_v37 = vmul.f32 0.0078125, %v2606_v49 }
 0x92f   : > { %v2611_v30 = vsub.f32 %v2597_v26, %v2609_v37 }
 0x930   : > { %v2608_v31 = vpop.xlane.xlu0 %2607 }
 0x931   : > { %v2610_v32 = vmul.f32 0.0078125, %v2608_v31  ;;  %v2613_v53 = vmul.f32 %v2611_v30, %v2611_v30 }
 0x933   : > { %v2612_v33 = vsub.f32 %v2598_v29, %v2610_v32  ;;  %2615 = vadd.xlane.f32.xlu1 %v2613_v53 }
 0x935   : > { %v2614_v56 = vmul.f32 %v2612_v33, %v2612_v33 }
 0x937   : > { %2617 = vadd.xlane.f32.xlu1 %v2614_v56 }
 0x9c0   : > { %v2616_v8 = vpop.xlane.xlu1 %2615 }
 0x9c1   : > { %v2619_v59 = vmul.f32 0.0078125, %v2616_v8 }
 0x9c3   : > { %v2621_v9 = vadd.f32 1e-05, %v2619_v59 }
 0x9c4   : > { %v2618_v23 = vpop.xlane.xlu1 %2617 }
 0x9c5   : > { %3416 = vrsqrt.f32 %v2621_v9  ;;  %v2620_v12 = vmul.f32 0.0078125, %v2618_v23 }
 0x9c7   : > { %v2622_v34 = vadd.f32 1e-05, %v2620_v12 }
 0x9c9   : > { %3418 = vrsqrt.f32 %v2622_v34 }
 0x9cf   : > { %v3417_v35 = vpop.eup %3416 }
 0x9d0   : > { %v2625_v60 = vmul.f32 %v3417_v35, %v2611_v30 }
 0x9d2   : > { %v2634_v39 = vmul.f32 %v2943_v36, %v2625_v60 }
 0x9d3   : > { %v3419_v54 = vpop.eup %3418 }
 0x9d4   : > { %v2643_v57 = vadd.f32 %v2944_v38, %v2634_v39  ;;  %v2626_v40 = vmul.f32 %v3419_v54, %v2612_v33 }
 0x9d6   : > { %2645 = vst [vmem:[#allocation8] sm:$0xff] %v2643_v57  ;;  %v2635_v41 = vmul.f32 %v2943_v36, %v2626_v40 }
 0x9d8   : > { %v2644_v42 = vadd.f32 %v2944_v38, %v2635_v41 }
 0x9da   : > { %2646 = vst [vmem:[#allocation8 + $0x8] sm:$0xff] %v2644_v42 }
 0x9db PF: > { %p3151_p6 = scmp.eq.s32.totalorder %s3673_s28, 1  ;;  %s3562_s25 = smov [#allocation8]  }
 0x9dc   : > { %s2653_s12 = sshll.u32 %s3562_s25, 4  ;;  %s2654_s12 = int_to_ptr.vmem [resolvable:$true] %s2653_s12 }
 0x9dd   : > { %s3480_s0 = scalar_lea.vmem %s2654_s12, 256  ;;  %p3487_p13 = scmp.lt.s32.totalorder %s2654_s12, %s2654_s12 }
 0x9de   : > { %p3481_p1 = scmp.ne.s32.totalorder %s2654_s12, %s3480_s0  ;;  %p3488_p4 = scmp.lt.s32.totalorder %s3480_s0, %s3480_s0 }
 0x9e0   : > { %p3482_p2 = pnand %p3481_p1, %p3151_p6  ;;  %p3489_p5 = por %p3488_p4, %p3487_p13 }
 0x9e2   : > { %p3483_p9 = pneg %p3482_p2 }
 0x9e4   : > { %p3490_p10 = pnand %p3489_p5, %p3483_p9 }
 0x9e6   : > { %3493 = shalt.err (!%p3490_p10)
}
 0x9e7   : > { %s4268_s23 = sld [smem:[#allocation23_spill]] }
 0x9ed   : > { %s3494_s6 = scalar_lea.hbm %s4268_s23, 256 }
 0x9ee   : > { %p3495_p12 = scmp.ne.s32.totalorder %s4268_s23, %s3494_s6  ;;  %p3500_p8 = scmp.lt.u32.totalorder %s3494_s6, %s4268_s23 }
 0x9f0   : > { %p3496_p0 = pnand %p3495_p12, %p3151_p6 }
 0x9f2   : > { %p3497_p7 = pneg %p3496_p0 }
 0x9f4   : > { %p3502_p11 = pnand %p3500_p8, %p3497_p7 }
 0x9f6   : > { %3505 = shalt.err (!%p3502_p11)
}
 0x9f7   : > { %s3563_s5 = smov 128  }
 0x9f8   : > { %3140 = dma.vmem_to_hbm [thread:$0]  (%p3151_p6), %s2654_s12, 256, %s4268_s23, [#allocation5], %s3563_s5, %s3563_s5, %s3557_s19  }
 0x9f9   : > { %3531 = dma.done.wait (%p3151_p6), [#allocation5], 256  }
 0x9fa   : > { %3533 = vsyncadd (%p3151_p6), [#allocation5], 4294967040 }
 0x9fb PF: > { %s4269_s27 = sld [smem:[#allocation14_spill]]  ;;  %s4270_s24 = sld [smem:[#allocation12_spill]] }
 0x9fc   : > { %s4271_s25 = sld [smem:[#allocation13_spill]]  ;;  %s4272_s26 = sld [smem:[#allocation15_spill]] }
 0xa01   : > { %p31_p3 = scmp.ge.s32.totalorder %s4269_s27, 4  }
 0xa03   :  { %33 = sbr.rel (!%p31_p3) target bundleno = 15 (0xf), region = 170 }
 0xa0a   :  { %2669 = vsyncpa [#allocation4], 1 }
 0xa0b   :  { %2671 = vsyncpa [#allocation4 + $0x1], 1 }
 0xa0c   :  { %2672 = vsyncpa [#allocation7], 1 }
 0xa0d   :  { %2674 = vsyncpa [#allocation7 + $0x1], 1 }
 0xa0e   :  { %2675 = vsyncpa [#allocation5], 1 }
 0xa0f   :  { %2677 = vsyncpa [#allocation5 + $0x1], 1 }

</bundles_post_ra>
